<compile_context>
chip_gen: v7x
topology: tpu7x:2x2x1
jax: 0.10.0
libtpu: 0.0.40
codegen_flags: <defaults>
</compile_context>

<pallas_src>
import functools

import jax
import jax.numpy as jnp
from jax import lax
from jax.experimental import pallas as pl
from jax.experimental.pallas import tpu as pltpu


# Cast MXU operands to this dtype (accumulation stays f32 via
# preferred_element_type).  jnp.float32 keeps exact parity with the PyTorch
# module; set to jnp.bfloat16 on v6e/v7x for ~2x MXU throughput and half the
# weight/activation footprint (VPU/EUP paths stay f32, which v5e requires).
MXU_DTYPE = jnp.float32


# ---------------------------------------------------------------------------
# Kernel 1: aggr + embed + pad + (3 convs merged) + BatchNorm + ReLU
# ---------------------------------------------------------------------------
def _frontend_kernel(wa_ref, x_ref, we_ref, be_ref, w7_ref, gamma_ref,
                     beta_ref, out_ref, *, maxpad, eps):
    N, D, B, T = x_ref.shape
    E = we_ref.shape[1]

    # aggr (Conv1d D->1, k=1): scalar-weighted sum of the D channel slices.
    # D is tiny, so this stays on the VPU as D fused multiply-adds without
    # materializing an (N, D, B, T) broadcast temporary; the aggr bias is
    # folded into be_ref by the wrapper.
    agg = x_ref[:, 0, :, :] * wa_ref[0]
    for d in range(1, D):
        agg = agg + x_ref[:, d, :, :] * wa_ref[d]

    # embed Linear(T -> E): one MXU contraction over the vocab axis.
    emb = jnp.einsum('nbt,te->nbe',
                     agg.astype(MXU_DTYPE), we_ref[...].astype(MXU_DTYPE),
                     preferred_element_type=jnp.float32) + be_ref[...]

    # zero 'same' padding once for all three convolutions, done in-kernel so
    # the (N, B, E) activation never round-trips through HBM.
    zpad = jnp.zeros((N, maxpad, E), jnp.float32)
    xp = jnp.concatenate([zpad, emb, zpad], axis=1)        # (N, B+2*maxpad, E)

    # cnn/cnn2/cnn3 merged into 7 taps: per tap a single matmul against a
    # combined (E, 3E) weight (zero-padded where a conv has no such tap).
    # This replaces the 15 small per-tap (E,E) einsums and removes the
    # lane-axis concatenate of the three conv outputs.  Conv biases are
    # omitted: training-mode BatchNorm subtracts the per-channel mean, which
    # cancels a per-channel constant bias exactly.
    y = None
    for j in range(2 * maxpad + 1):
        win = xp[:, j:j + B, :].astype(MXU_DTYPE)          # (N, B, E)
        part = jnp.einsum('nbe,ef->nbf', win, w7_ref[j].astype(MXU_DTYPE),
                          preferred_element_type=jnp.float32)
        y = part if y is None else y + part                # (N, B, 3E)

    # BatchNorm1d (training-mode batch statistics, biased variance) + ReLU,
    # single pass over y (var = E[y^2] - mean^2).
    cnt = jnp.float32(N * B)
    mean = jnp.sum(y, axis=(0, 1), keepdims=True) / cnt
    var = jnp.sum(y * y, axis=(0, 1), keepdims=True) / cnt - mean * mean
    yn = (y - mean) * lax.rsqrt(var + eps)
    out_ref[...] = jnp.maximum(yn * gamma_ref[...] + beta_ref[...], 0.0)


# ---------------------------------------------------------------------------
# Kernel 2: 2-layer LSTM (packed-sequence mask) + final linear head
# ---------------------------------------------------------------------------
def _lstm_head_kernel(len_ref, seq_ref, w0_ref, b0_ref, w1_ref, b1_ref,
                      wlin_ref, blin_ref, out_ref, *, hidden):
    bn, B, C = seq_ref.shape
    H = hidden
    lens = len_ref[:, 0, :]                                # (bn, 1) int32

    # fused [x | h] weights, stacked by the wrapper: rows [0:in) = W_ih^T,
    # rows [in:in+H) = W_hh^T; bias = b_ih + b_hh (pre-summed).
    w0 = w0_ref[...].astype(MXU_DTYPE)                     # (C + H, 4H)
    w1 = w1_ref[...].astype(MXU_DTYPE)                     # (2H, 4H)
    b0 = b0_ref[...]
    b1 = b1_ref[...]

    def cell(x_t, h, c, w, b):
        # one fused MXU matmul per cell: [x_t | h] @ [W_ih; W_hh]
        xh = jnp.concatenate([x_t, h], axis=-1).astype(MXU_DTYPE)
        g = jnp.dot(xh, w, preferred_element_type=jnp.float32) + b
        # PyTorch gate order (i, f, g, o).  For production H (>=128) these
        # slices land on 128-lane boundaries and the extraction is free.
        i = jax.nn.sigmoid(g[:, 0:H])
        f = jax.nn.sigmoid(g[:, H:2 * H])
        u = jnp.tanh(g[:, 2 * H:3 * H])
        o = jax.nn.sigmoid(g[:, 3 * H:4 * H])
        c_new = f * c + i * u
        return o * jnp.tanh(c_new), c_new

    z = jnp.zeros((bn, H), jnp.float32)
    h0, c0, h1, c1 = z, z, z, z

    # Fully unrolled static time loop (B is static): gives the scheduler
    # cross-step visibility on the serial critical path.  Each step loads
    # only its (bn, C) slice of the VMEM-resident sequence block.
    # pack_padded_sequence semantics: state updates are frozen for t >= len.
    # TODO(synk): for long sequences switch to lax.fori_loop(..., unroll=k)
    # over a time-major block to bound code size.
    for t in range(B):
        x_t = seq_ref[:, t, :]                             # (bn, C)
        m = (t < lens).astype(jnp.float32)                 # (bn, 1)
        h0n, c0n = cell(x_t, h0, c0, w0, b0)
        h0 = m * h0n + (1.0 - m) * h0
        c0 = m * c0n + (1.0 - m) * c0
        h1n, c1n = cell(h0, h1, c1, w1, b1)
        h1 = m * h1n + (1.0 - m) * h1
        c1 = m * c1n + (1.0 - m) * c1

    # final linear head on hn[-1]
    out_ref[:, 0, :] = (jnp.dot(h1.astype(MXU_DTYPE),
                                wlin_ref[...].astype(MXU_DTYPE),
                                preferred_element_type=jnp.float32)
                        + blin_ref[...])


# ---------------------------------------------------------------------------
# Wrapper
# ---------------------------------------------------------------------------
def icassp3cnn_forward(x, lengths, params):
    N, D, B, T = x.shape
    E = params['we'].shape[1]
    H = params['hidden']
    L = params['label_size']
    C = 3 * E
    maxpad = 3

    # --- tiny, weight-sized parameter prep (cache these in real use) --------
    wa = params['wa'].reshape(D)                                      # (D,)
    # aggr bias folds into the embed bias: (agg + ba) @ We = agg @ We + ba*sum_t We
    be_eff = params['be'] + params['ba'][0, 0] * jnp.sum(
        params['we'], axis=0, keepdims=True)
    # merged 7-tap conv weight (taps 0..6 == offsets -3..+3), zero-padded
    w7 = jnp.zeros((2 * maxpad + 1, E, C), jnp.float32)
    w7 = w7.at[2:5, :, 0:E].set(params['w1'])            # k=3, pad=1
    w7 = w7.at[1:6, :, E:2 * E].set(params['w2'])        # k=5, pad=2
    w7 = w7.at[0:7, :, 2 * E:3 * E].set(params['w3'])    # k=7, pad=3
    # stacked LSTM weights for the fused [x | h] matmul
    w_l0 = jnp.concatenate([params['wih0'], params['whh0']], axis=0)  # (C+H, 4H)
    w_l1 = jnp.concatenate([params['wih1'], params['whh1']], axis=0)  # (2H, 4H)
    lens3 = lengths.astype(jnp.int32).reshape(N, 1, 1)

    vmem = pl.BlockSpec(memory_space=pltpu.MemorySpace.VMEM)
    smem = pl.BlockSpec(memory_space=pltpu.MemorySpace.SMEM)

    # ---- kernel 1: aggr + embed + pad + 3 convs + BN + ReLU, fully fused ---
    # Grid-less: BatchNorm couples the whole (N, B) batch, and at these
    # shapes everything fits comfortably in VMEM.
    # TODO(synk): for large N*B, tile over N with a two-pass BN (partial sums
    # + finalize) so this kernel pipelines and shards across cores too.
    act = pl.pallas_call(
        functools.partial(_frontend_kernel, maxpad=maxpad, eps=1e-5),
        out_shape=jax.ShapeDtypeStruct((N, B, C), jnp.float32),
        in_specs=[smem, vmem, vmem, vmem, vmem, vmem, vmem],
        out_specs=vmem,
        compiler_params=pltpu.CompilerParams(
            vmem_limit_bytes=32 * 1024 * 1024),
    )(wa, x, params['we'], be_eff, w7, params['gamma'], params['beta'])

    # ---- kernel 2: 2-layer LSTM (length mask) + linear head ----------------
    # Batch-tiled grid marked 'parallel' (the LSTM is embarrassingly parallel
    # over the batch; on v7x this shards across the 2 TensorCores).  The
    # activation stays batch-major (N, B, C), so no XLA transpose glue.
    bn = 8 if N % 8 == 0 else 1
    grid = (N // bn,)
    logits3 = pl.pallas_call(
        functools.partial(_lstm_head_kernel, hidden=H),
        out_shape=jax.ShapeDtypeStruct((N, 1, L), jnp.float32),
        grid_spec=pltpu.PrefetchScalarGridSpec(
            num_scalar_prefetch=0,
            grid=grid,
            in_specs=[
                pl.BlockSpec((bn, 1, 1), lambda n: (n, 0, 0)),      # lengths
                pl.BlockSpec((bn, B, C), lambda n: (n, 0, 0)),      # activations
                pl.BlockSpec((C + H, 4 * H), lambda n: (0, 0)),     # layer-0 W
                pl.BlockSpec((1, 4 * H), lambda n: (0, 0)),         # layer-0 b
                pl.BlockSpec((2 * H, 4 * H), lambda n: (0, 0)),     # layer-1 W
                pl.BlockSpec((1, 4 * H), lambda n: (0, 0)),         # layer-1 b
                pl.BlockSpec((H, L), lambda n: (0, 0)),             # head W
                pl.BlockSpec((1, L), lambda n: (0, 0)),             # head b
            ],
            out_specs=pl.BlockSpec((bn, 1, L), lambda n: (n, 0, 0)),
        ),
        compiler_params=pltpu.CompilerParams(
            dimension_semantics=("parallel",),
            vmem_limit_bytes=32 * 1024 * 1024),
    )(lens3, act, w_l0, params['b_l0'], w_l1, params['b_l1'],
      params['wlin'], params['blin'])
    return logits3.reshape(N, L)


def make_params(key, D, T, E, H, L):
    ks = jax.random.split(key, 16)

    def rnd(k, shape, scale=0.1):
        return (scale * jax.random.normal(k, shape)).astype(jnp.float32)

    C = 3 * E  # LSTM input size = 3 * embed_size
    return dict(
        # aggr: Conv1d(D -> 1, k=1): weight (1, D), bias (1, 1)
        wa=rnd(ks[0], (1, D)), ba=rnd(ks[1], (1, 1)),
        # embed: Linear(T -> E), stored transposed (T, E); bias (1, E)
        we=rnd(ks[2], (T, E)), be=rnd(ks[3], (1, E)),
        # convs: weights stored as (K, in, out) == PyTorch (out, in, K) transposed.
        # Conv biases (b1/b2/b3) are kept for checkpoint parity but are NOT used:
        # training-mode BatchNorm mean-subtraction cancels them exactly.
        w1=rnd(ks[4], (3, E, E)), b1=rnd(ks[5], (1, E)),
        w2=rnd(ks[6], (5, E, E)), b2=rnd(ks[7], (1, E)),
        w3=rnd(ks[8], (7, E, E)), b3=rnd(ks[9], (1, E)),
        # batchnorm affine params (default init: gamma=1, beta=0)
        gamma=jnp.ones((1, C), jnp.float32), beta=jnp.zeros((1, C), jnp.float32),
        # LSTM layer 0: W_ih^T (C, 4H), W_hh^T (H, 4H), fused bias (1, 4H).
        # NOTE: the fused bias is PyTorch's b_ih + b_hh pre-summed by the caller.
        wih0=rnd(ks[10], (C, 4 * H)), whh0=rnd(ks[11], (H, 4 * H)),
        b_l0=rnd(ks[12], (1, 4 * H)),
        # LSTM layer 1
        wih1=rnd(ks[13], (H, 4 * H)), whh1=rnd(ks[14], (H, 4 * H)),
        b_l1=rnd(ks[15], (1, 4 * H)),
        # final linear (H -> label_size), stored transposed
        wlin=rnd(jax.random.fold_in(key, 100), (H, L)),
        blin=rnd(jax.random.fold_in(key, 101), (1, L)),
        hidden=H, label_size=L,
    )


if __name__ == "__main__":
    key = jax.random.PRNGKey(0)
    # small shapes consistent with the forward:
    #   N=batch, D=dims, B=sequence length, T=vocab_size
    N, D, B, T = 2, 4, 10, 16
    E, H, L = 32, 32, 6                    # embed_size, hidden_size, label_size

    kx, kp = jax.random.split(key)
    x = jax.random.normal(kx, (N, D, B, T), dtype=jnp.float32)
    lengths = jnp.array([10, 7], dtype=jnp.int32)   # per-sequence valid lengths

    params = make_params(kp, D, T, E, H, L)

    logits = icassp3cnn_forward(x, lengths, params)
    jax.block_until_ready(logits)
    assert logits.shape == (N, L) and logits.dtype == jnp.float32
    print("KERNEL_OK")
</pallas_src>

<mosaic_0001>
module attributes {stable_mosaic.version = 11 : i64} {
  func.func @_frontend_kernel(%arg0: memref<4xf32, #tpu.memory_space<smem>>, %arg1: memref<2x4x10x16xf32, #tpu.memory_space<vmem>>, %arg2: memref<16x32xf32, #tpu.memory_space<vmem>>, %arg3: memref<1x32xf32, #tpu.memory_space<vmem>>, %arg4: memref<7x32x96xf32, #tpu.memory_space<vmem>>, %arg5: memref<1x96xf32, #tpu.memory_space<vmem>>, %arg6: memref<1x96xf32, #tpu.memory_space<vmem>>, %arg7: memref<2x10x96xf32, #tpu.memory_space<vmem>>) attributes {dimension_semantics = [], scalar_prefetch = 0 : i64, scratch_operands = 0 : i64, tpu.core_type = #tpu.core_type<tc>} {
    %c0 = arith.constant 0 : index
    %c0_0 = arith.constant 0 : index
    %c0_1 = arith.constant 0 : index
    %c0_2 = arith.constant 0 : index
    %0 = vector.load %arg1[%c0, %c0_0, %c0_1, %c0_2] : memref<2x4x10x16xf32, #tpu.memory_space<vmem>>, vector<2x1x10x16xf32>
    %1 = vector.shape_cast %0 : vector<2x1x10x16xf32> to vector<2x10x16xf32>
    %c0_3 = arith.constant 0 : index
    %2 = memref.load %arg0[%c0_3] : memref<4xf32, #tpu.memory_space<smem>>
    %3 = vector.broadcast %2 : f32 to vector<2x10x16xf32>
    %4 = arith.mulf %1, %3 : vector<2x10x16xf32>
    %c0_4 = arith.constant 0 : index
    %c1 = arith.constant 1 : index
    %c0_5 = arith.constant 0 : index
    %c0_6 = arith.constant 0 : index
    %5 = vector.load %arg1[%c0_4, %c1, %c0_5, %c0_6] : memref<2x4x10x16xf32, #tpu.memory_space<vmem>>, vector<2x1x10x16xf32>
    %6 = vector.shape_cast %5 : vector<2x1x10x16xf32> to vector<2x10x16xf32>
    %c1_7 = arith.constant 1 : index
    %7 = memref.load %arg0[%c1_7] : memref<4xf32, #tpu.memory_space<smem>>
    %8 = vector.broadcast %7 : f32 to vector<2x10x16xf32>
    %9 = arith.mulf %6, %8 : vector<2x10x16xf32>
    %10 = arith.addf %4, %9 : vector<2x10x16xf32>
    %c0_8 = arith.constant 0 : index
    %c2 = arith.constant 2 : index
    %c0_9 = arith.constant 0 : index
    %c0_10 = arith.constant 0 : index
    %11 = vector.load %arg1[%c0_8, %c2, %c0_9, %c0_10] : memref<2x4x10x16xf32, #tpu.memory_space<vmem>>, vector<2x1x10x16xf32>
    %12 = vector.shape_cast %11 : vector<2x1x10x16xf32> to vector<2x10x16xf32>
    %c2_11 = arith.constant 2 : index
    %13 = memref.load %arg0[%c2_11] : memref<4xf32, #tpu.memory_space<smem>>
    %14 = vector.broadcast %13 : f32 to vector<2x10x16xf32>
    %15 = arith.mulf %12, %14 : vector<2x10x16xf32>
    %16 = arith.addf %10, %15 : vector<2x10x16xf32>
    %c0_12 = arith.constant 0 : index
    %c3 = arith.constant 3 : index
    %c0_13 = arith.constant 0 : index
    %c0_14 = arith.constant 0 : index
    %17 = vector.load %arg1[%c0_12, %c3, %c0_13, %c0_14] : memref<2x4x10x16xf32, #tpu.memory_space<vmem>>, vector<2x1x10x16xf32>
    %18 = vector.shape_cast %17 : vector<2x1x10x16xf32> to vector<2x10x16xf32>
    %c3_15 = arith.constant 3 : index
    %19 = memref.load %arg0[%c3_15] : memref<4xf32, #tpu.memory_space<smem>>
    %20 = vector.broadcast %19 : f32 to vector<2x10x16xf32>
    %21 = arith.mulf %18, %20 : vector<2x10x16xf32>
    %22 = arith.addf %16, %21 : vector<2x10x16xf32>
    %c0_16 = arith.constant 0 : index
    %c0_17 = arith.constant 0 : index
    %23 = vector.load %arg2[%c0_16, %c0_17] : memref<16x32xf32, #tpu.memory_space<vmem>>, vector<16x32xf32>
    "tpu.trace_start"() <{level = 10 : i32, message = "nbt,te->nbe"}> : () -> ()
    %cst = arith.constant dense<0.000000e+00> : vector<2x10x32xf32>
    %24 = tpu.matmul %22, %23, %cst {dimension_numbers = #tpu.dot_dimension_numbers<[2], [0], [0, 1], [1], [0, 0, 0, 1, 1, 1], [], []>} : vector<2x10x16xf32>, vector<16x32xf32>, vector<2x10x32xf32> -> vector<2x10x32xf32>
    "tpu.trace_stop"() : () -> ()
    %c0_18 = arith.constant 0 : index
    %c0_19 = arith.constant 0 : index
    %25 = vector.load %arg3[%c0_18, %c0_19] : memref<1x32xf32, #tpu.memory_space<vmem>>, vector<1x32xf32>
    %26 = vector.shape_cast %25 : vector<1x32xf32> to vector<1x1x32xf32>
    %27 = vector.broadcast %26 : vector<1x1x32xf32> to vector<2x10x32xf32>
    %28 = arith.addf %24, %27 : vector<2x10x32xf32>
    %cst_20 = arith.constant 0.000000e+00 : f32
    %29 = vector.broadcast %cst_20 : f32 to vector<2x3x32xf32>
    %30 = tpu.concatenate %29, %28, %29 in 1 : vector<2x3x32xf32>, vector<2x10x32xf32>, vector<2x3x32xf32> -> vector<2x16x32xf32>
    %31 = vector.extract_strided_slice %30 {offsets = [0, 0, 0], sizes = [2, 10, 32], strides = [1, 1, 1]} : vector<2x16x32xf32> to vector<2x10x32xf32>
    %c0_21 = arith.constant 0 : index
    %c0_22 = arith.constant 0 : index
    %c0_23 = arith.constant 0 : index
    %32 = vector.load %arg4[%c0_21, %c0_22, %c0_23] : memref<7x32x96xf32, #tpu.memory_space<vmem>>, vector<1x32x96xf32>
    %33 = vector.shape_cast %32 : vector<1x32x96xf32> to vector<32x96xf32>
    "tpu.trace_start"() <{level = 10 : i32, message = "nbe,ef->nbf"}> : () -> ()
    %cst_24 = arith.constant dense<0.000000e+00> : vector<2x10x96xf32>
    %34 = tpu.matmul %31, %33, %cst_24 {dimension_numbers = #tpu.dot_dimension_numbers<[2], [0], [0, 1], [1], [0, 0, 0, 1, 1, 1], [], []>} : vector<2x10x32xf32>, vector<32x96xf32>, vector<2x10x96xf32> -> vector<2x10x96xf32>
    "tpu.trace_stop"() : () -> ()
    %35 = vector.extract_strided_slice %30 {offsets = [0, 1, 0], sizes = [2, 10, 32], strides = [1, 1, 1]} : vector<2x16x32xf32> to vector<2x10x32xf32>
    %c1_25 = arith.constant 1 : index
    %c0_26 = arith.constant 0 : index
    %c0_27 = arith.constant 0 : index
    %36 = vector.load %arg4[%c1_25, %c0_26, %c0_27] : memref<7x32x96xf32, #tpu.memory_space<vmem>>, vector<1x32x96xf32>
    %37 = vector.shape_cast %36 : vector<1x32x96xf32> to vector<32x96xf32>
    "tpu.trace_start"() <{level = 10 : i32, message = "nbe,ef->nbf"}> : () -> ()
    %cst_28 = arith.constant dense<0.000000e+00> : vector<2x10x96xf32>
    %38 = tpu.matmul %35, %37, %cst_28 {dimension_numbers = #tpu.dot_dimension_numbers<[2], [0], [0, 1], [1], [0, 0, 0, 1, 1, 1], [], []>} : vector<2x10x32xf32>, vector<32x96xf32>, vector<2x10x96xf32> -> vector<2x10x96xf32>
    "tpu.trace_stop"() : () -> ()
    %39 = arith.addf %34, %38 : vector<2x10x96xf32>
    %40 = vector.extract_strided_slice %30 {offsets = [0, 2, 0], sizes = [2, 10, 32], strides = [1, 1, 1]} : vector<2x16x32xf32> to vector<2x10x32xf32>
    %c2_29 = arith.constant 2 : index
    %c0_30 = arith.constant 0 : index
    %c0_31 = arith.constant 0 : index
    %41 = vector.load %arg4[%c2_29, %c0_30, %c0_31] : memref<7x32x96xf32, #tpu.memory_space<vmem>>, vector<1x32x96xf32>
    %42 = vector.shape_cast %41 : vector<1x32x96xf32> to vector<32x96xf32>
    "tpu.trace_start"() <{level = 10 : i32, message = "nbe,ef->nbf"}> : () -> ()
    %cst_32 = arith.constant dense<0.000000e+00> : vector<2x10x96xf32>
    %43 = tpu.matmul %40, %42, %cst_32 {dimension_numbers = #tpu.dot_dimension_numbers<[2], [0], [0, 1], [1], [0, 0, 0, 1, 1, 1], [], []>} : vector<2x10x32xf32>, vector<32x96xf32>, vector<2x10x96xf32> -> vector<2x10x96xf32>
    "tpu.trace_stop"() : () -> ()
    %44 = arith.addf %39, %43 : vector<2x10x96xf32>
    %45 = vector.extract_strided_slice %30 {offsets = [0, 3, 0], sizes = [2, 10, 32], strides = [1, 1, 1]} : vector<2x16x32xf32> to vector<2x10x32xf32>
    %c3_33 = arith.constant 3 : index
    %c0_34 = arith.constant 0 : index
    %c0_35 = arith.constant 0 : index
    %46 = vector.load %arg4[%c3_33, %c0_34, %c0_35] : memref<7x32x96xf32, #tpu.memory_space<vmem>>, vector<1x32x96xf32>
    %47 = vector.shape_cast %46 : vector<1x32x96xf32> to vector<32x96xf32>
    "tpu.trace_start"() <{level = 10 : i32, message = "nbe,ef->nbf"}> : () -> ()
    %cst_36 = arith.constant dense<0.000000e+00> : vector<2x10x96xf32>
    %48 = tpu.matmul %45, %47, %cst_36 {dimension_numbers = #tpu.dot_dimension_numbers<[2], [0], [0, 1], [1], [0, 0, 0, 1, 1, 1], [], []>} : vector<2x10x32xf32>, vector<32x96xf32>, vector<2x10x96xf32> -> vector<2x10x96xf32>
    "tpu.trace_stop"() : () -> ()
    %49 = arith.addf %44, %48 : vector<2x10x96xf32>
    %50 = vector.extract_strided_slice %30 {offsets = [0, 4, 0], sizes = [2, 10, 32], strides = [1, 1, 1]} : vector<2x16x32xf32> to vector<2x10x32xf32>
    %c4 = arith.constant 4 : index
    %c0_37 = arith.constant 0 : index
    %c0_38 = arith.constant 0 : index
    %51 = vector.load %arg4[%c4, %c0_37, %c0_38] : memref<7x32x96xf32, #tpu.memory_space<vmem>>, vector<1x32x96xf32>
    %52 = vector.shape_cast %51 : vector<1x32x96xf32> to vector<32x96xf32>
    "tpu.trace_start"() <{level = 10 : i32, message = "nbe,ef->nbf"}> : () -> ()
    %cst_39 = arith.constant dense<0.000000e+00> : vector<2x10x96xf32>
    %53 = tpu.matmul %50, %52, %cst_39 {dimension_numbers = #tpu.dot_dimension_numbers<[2], [0], [0, 1], [1], [0, 0, 0, 1, 1, 1], [], []>} : vector<2x10x32xf32>, vector<32x96xf32>, vector<2x10x96xf32> -> vector<2x10x96xf32>
    "tpu.trace_stop"() : () -> ()
    %54 = arith.addf %49, %53 : vector<2x10x96xf32>
    %55 = vector.extract_strided_slice %30 {offsets = [0, 5, 0], sizes = [2, 10, 32], strides = [1, 1, 1]} : vector<2x16x32xf32> to vector<2x10x32xf32>
    %c5 = arith.constant 5 : index
    %c0_40 = arith.constant 0 : index
    %c0_41 = arith.constant 0 : index
    %56 = vector.load %arg4[%c5, %c0_40, %c0_41] : memref<7x32x96xf32, #tpu.memory_space<vmem>>, vector<1x32x96xf32>
    %57 = vector.shape_cast %56 : vector<1x32x96xf32> to vector<32x96xf32>
    "tpu.trace_start"() <{level = 10 : i32, message = "nbe,ef->nbf"}> : () -> ()
    %cst_42 = arith.constant dense<0.000000e+00> : vector<2x10x96xf32>
    %58 = tpu.matmul %55, %57, %cst_42 {dimension_numbers = #tpu.dot_dimension_numbers<[2], [0], [0, 1], [1], [0, 0, 0, 1, 1, 1], [], []>} : vector<2x10x32xf32>, vector<32x96xf32>, vector<2x10x96xf32> -> vector<2x10x96xf32>
    "tpu.trace_stop"() : () -> ()
    %59 = arith.addf %54, %58 : vector<2x10x96xf32>
    %60 = vector.extract_strided_slice %30 {offsets = [0, 6, 0], sizes = [2, 10, 32], strides = [1, 1, 1]} : vector<2x16x32xf32> to vector<2x10x32xf32>
    %c6 = arith.constant 6 : index
    %c0_43 = arith.constant 0 : index
    %c0_44 = arith.constant 0 : index
    %61 = vector.load %arg4[%c6, %c0_43, %c0_44] : memref<7x32x96xf32, #tpu.memory_space<vmem>>, vector<1x32x96xf32>
    %62 = vector.shape_cast %61 : vector<1x32x96xf32> to vector<32x96xf32>
    "tpu.trace_start"() <{level = 10 : i32, message = "nbe,ef->nbf"}> : () -> ()
    %cst_45 = arith.constant dense<0.000000e+00> : vector<2x10x96xf32>
    %63 = tpu.matmul %60, %62, %cst_45 {dimension_numbers = #tpu.dot_dimension_numbers<[2], [0], [0, 1], [1], [0, 0, 0, 1, 1, 1], [], []>} : vector<2x10x32xf32>, vector<32x96xf32>, vector<2x10x96xf32> -> vector<2x10x96xf32>
    "tpu.trace_stop"() : () -> ()
    %64 = arith.addf %59, %63 : vector<2x10x96xf32>
    %cst_46 = arith.constant dense<0.000000e+00> : vector<96xf32>
    %65 = vector.multi_reduction <add>, %64, %cst_46 [0, 1] : vector<2x10x96xf32> to vector<96xf32>
    %66 = vector.shape_cast %65 : vector<96xf32> to vector<1x1x96xf32>
    %cst_47 = arith.constant 2.000000e+01 : f32
    %67 = vector.broadcast %cst_47 : f32 to vector<1x1x96xf32>
    %68 = arith.divf %66, %67 : vector<1x1x96xf32>
    %69 = arith.mulf %64, %64 : vector<2x10x96xf32>
    %cst_48 = arith.constant dense<0.000000e+00> : vector<96xf32>
    %70 = vector.multi_reduction <add>, %69, %cst_48 [0, 1] : vector<2x10x96xf32> to vector<96xf32>
    %71 = vector.shape_cast %70 : vector<96xf32> to vector<1x1x96xf32>
    %cst_49 = arith.constant 2.000000e+01 : f32
    %72 = vector.broadcast %cst_49 : f32 to vector<1x1x96xf32>
    %73 = arith.divf %71, %72 : vector<1x1x96xf32>
    %74 = arith.mulf %68, %68 : vector<1x1x96xf32>
    %75 = arith.subf %73, %74 : vector<1x1x96xf32>
    %76 = vector.broadcast %68 : vector<1x1x96xf32> to vector<2x10x96xf32>
    %77 = arith.subf %64, %76 : vector<2x10x96xf32>
    %cst_50 = arith.constant 9.99999974E-6 : f32
    %78 = vector.broadcast %cst_50 : f32 to vector<1x1x96xf32>
    %79 = arith.addf %75, %78 : vector<1x1x96xf32>
    %80 = math.rsqrt %79 : vector<1x1x96xf32>
    %81 = vector.broadcast %80 : vector<1x1x96xf32> to vector<2x10x96xf32>
    %82 = arith.mulf %77, %81 : vector<2x10x96xf32>
    %c0_51 = arith.constant 0 : index
    %c0_52 = arith.constant 0 : index
    %83 = vector.load %arg5[%c0_51, %c0_52] : memref<1x96xf32, #tpu.memory_space<vmem>>, vector<1x96xf32>
    %84 = vector.shape_cast %83 : vector<1x96xf32> to vector<1x1x96xf32>
    %85 = vector.broadcast %84 : vector<1x1x96xf32> to vector<2x10x96xf32>
    %86 = arith.mulf %82, %85 : vector<2x10x96xf32>
    %c0_53 = arith.constant 0 : index
    %c0_54 = arith.constant 0 : index
    %87 = vector.load %arg6[%c0_53, %c0_54] : memref<1x96xf32, #tpu.memory_space<vmem>>, vector<1x96xf32>
    %88 = vector.shape_cast %87 : vector<1x96xf32> to vector<1x1x96xf32>
    %89 = vector.broadcast %88 : vector<1x1x96xf32> to vector<2x10x96xf32>
    %90 = arith.addf %86, %89 : vector<2x10x96xf32>
    %cst_55 = arith.constant 0.000000e+00 : f32
    %91 = vector.broadcast %cst_55 : f32 to vector<2x10x96xf32>
    %92 = arith.maximumf %90, %91 : vector<2x10x96xf32>
    %c0_56 = arith.constant 0 : index
    %c0_57 = arith.constant 0 : index
    %c0_58 = arith.constant 0 : index
    %93 = vector.load %arg7[%c0_56, %c0_57, %c0_58] : memref<2x10x96xf32, #tpu.memory_space<vmem>>, vector<2x10x96xf32>
    tpu.vector_store %arg7[%c0_56, %c0_57, %c0_58], %92 {strides = array<i32>} : memref<2x10x96xf32, #tpu.memory_space<vmem>>, vector<2x10x96xf32>,
    return
  }
}

</mosaic_0001>

<bundles_post_ra>
// kernel: tpu_custom_call.1
= control target key start
LH: loop header
LB: loop body
LE: loop exit
PB: predicated region body
PF: predicated region fallthrough
CT: control target
= control target key end

     0   :  { %12 = vsyncpa [#allocation4], 0  ;;  %s3220_s0 = inlined_call_operand.vmem [shape: f32[4], index: 0, kind: input, shape index: {}]   ;;  %s3221_s1 = inlined_call_operand.vmem [shape: f32[2,4,10,16], index: 1, kind: input, shape index: {}]   ;;  %s3222_s2 = inlined_call_operand.vmem [shape: f32[16,32], index: 2, kind: input, shape index: {}]   ;;  %s3223_s3 = inlined_call_operand.vmem [shape: f32[1,32], index: 3, kind: input, shape index: {}]   ;;  %s3224_s4 = inlined_call_operand.hbm [shape: f32[7,32,96], index: 4, kind: input, shape index: {}]   ;;  %s3225_s5 = inlined_call_operand.vmem [shape: f32[1,96], index: 5, kind: input, shape index: {}]   ;;  %s3226_s6 = inlined_call_operand.vmem [shape: f32[1,96], index: 6, kind: input, shape index: {}]   ;;  %s3227_s7 = inlined_call_operand.vmem [shape: f32[2,10,96], index: 7, kind: output, shape index: {}]  }
   0x1   :  { %s20_s26 = sshll.u32 %s3220_s0, 4  ;;  %s21_s26 = int_to_ptr.vmem [resolvable:$true] %s20_s26 }
   0x2   :  { %13 = vsyncpa [#allocation3], 0  ;;  %s2536_s27 = scalar_lea.vmem %s21_s26, 16  ;;  %p2541_p1 = scmp.lt.s32.totalorder %s21_s26, %s21_s26 }
   0x3   :  { %p2537_p0 = scmp.ne.s32.totalorder %s21_s26, %s2536_s27  ;;  %p2542_p2 = scmp.lt.s32.totalorder %s2536_s27, %s2536_s27 }
   0x5   :  { %p2543_p3 = por %p2542_p2, %p2541_p1 }
   0x7   :  { %p2544_p4 = pnand %p2543_p3, %p2537_p0 }
   0x9   :  { %2547 = shalt.err (!%p2544_p4)
}
   0xa   :  { %s2574_s28 = smov [#allocation2]   ;;  %s2575_s29 = smov [#allocation5]  }
   0xb   :  { %23 = dma.vmem_to_smem %s21_s26, 16, %s2574_s28, [#allocation4]  }
   0xc   :  { %s35_s30 = sshll.u32 %s2575_s29, 4  ;;  %s2548_s10 = scalar_lea.hbm %s3224_s4, 3584  ;;  %s36_s30 = int_to_ptr.vmem [resolvable:$true] %s35_s30 }
   0xd   :  { %p2549_p5 = scmp.ne.s32.totalorder %s3224_s4, %s2548_s10  ;;  %p2552_p6 = scmp.lt.u32.totalorder %s2548_s10, %s3224_s4 }
   0xf   :  { %p2554_p7 = pnand %p2552_p6, %p2549_p5 }
  0x11   :  { %2557 = shalt.err (!%p2554_p7)
}
  0x12   :  { %s2558_s14 = scalar_lea.vmem %s36_s30, 3584  ;;  %p2563_p9 = scmp.lt.s32.totalorder %s36_s30, %s36_s30 }
  0x13   :  { %p2559_p8 = scmp.ne.s32.totalorder %s36_s30, %s2558_s14  ;;  %p2564_p10 = scmp.lt.s32.totalorder %s2558_s14, %s2558_s14 }
  0x15   :  { %p2565_p11 = por %p2564_p10, %p2563_p9 }
  0x17   :  { %p2566_p12 = pnand %p2565_p11, %p2559_p8 }
  0x19   :  { %2569 = shalt.err (!%p2566_p12)
}
  0x1a   :  { %s2576_s15 = smov 128   ;;  %s2577_s16 = smov 8  }
  0x1b   :  { %41 = dma.hbm_to_vmem [thread:$0]  %s3224_s4, 3584, %s36_s30, [#allocation3], %s2576_s15, %s2576_s15, %s2577_s16  }
  0x1c   :  { %2570 = dma.done.wait [#allocation4], 16  }
  0x1d   :  { %2571 = vsyncadd [#allocation4], 4294967280 }
  0x1e   :  { %2572 = dma.done.wait [#allocation3], 3584  }
  0x1f   :  { %2573 = vsyncadd [#allocation3], 4294963712 }
  0x20   :  { %52 = sfence }
  0x21   :  { %v108_v0 = vld [vmem:[%s3222_s2] sm:$0xff]  ;;  %v109_v1 = vld [vmem:[%s3222_s2 + $0x8] sm:$0xff]  ;;  %v2578_v2 = vmov 0.0|0.0   ;;  %vm2579_vm0 = vmmov 0   ;;  %v2580_v4 = vmov 0.0   ;;  %s57_s4 = sld [smem:[#allocation2]]  ;;  %v124_v5 = vlaneseq }
  0x22   :  { %2475 = vmatprep.subr.bf16.mxu0 %v2578_v2  ;;  %v2476_v3 = vpack.c.bf16 %v109_v1, %v108_v0  ;;  %2347 = vmatprep.mubr.msk.f32.mxu0 %vm2579_vm0, %v2580_v4  ;;  %s2247_s23 = sld [smem:[#allocation2 + $0x1]]  ;;  %s2252_s24 = sld [smem:[#allocation2 + $0x2]]  ;;  %v53_v6 = vld [vmem:[%s3221_s1] sm:$0xff]  ;;  %v2243_v7 = vld [vmem:[%s3221_s1 + $0x10] sm:$0xff]  ;;  %v2581_v8 = vmov 1983009808  }
  0x23   :  { %s2257_s25 = sld [smem:[#allocation2 + $0x3]]  ;;  %2478 = vmatprep.subr.bf16.mxu1 %v2578_v2  ;;  %2364 = vmatprep.mubr.msk.f32.mxu1 %vm2579_vm0, %v2580_v4  ;;  %v122_v9 = vunpack.c.l.s4 %v2581_v8  ;;  %v2248_v10 = vld [vmem:[%s3221_s1 + $0x20] sm:$0xff]  ;;  %v2253_v11 = vld [vmem:[%s3221_s1 + $0x30] sm:$0xff]  ;;  %v125_v12 = vshrl.u32 %v124_v5, 7  ;;  %v54_v13 = vld [vmem:[%s3221_s1 + $0x8] sm:$0x3] }
  0x24   :  { %2477 = vmatpush3.bf16.msra.mxu0 %v2476_v3  ;;  %v55_v15 = vld [vmem:[%s3221_s1 + $0x40] sm:$0xff]  ;;  %v2244_v16 = vld [vmem:[%s3221_s1 + $0x18] sm:$0x3]  ;;  %v2245_v17 = vld [vmem:[%s3221_s1 + $0x50] sm:$0xff]  ;;  %vm272_vm1 = vcmask 130048   ;;  %vm531_vm2 = vcmask 1040384  }
  0x25   :  { %2490 = vmatprep.subr.bf16.mxu0 %v2578_v2  ;;  %v123_v14 = vunpack.c.0.s8 %v122_v9  ;;  %v2249_v20 = vld [vmem:[%s3221_s1 + $0x28] sm:$0x3]  ;;  %v2250_v21 = vld [vmem:[%s3221_s1 + $0x60] sm:$0xff]  ;;  %v2254_v26 = vld [vmem:[%s3221_s1 + $0x38] sm:$0x3]  ;;  %vm532_vm3 = vcmask 1042434  }
  0x26   :  { %v2255_v27 = vld [vmem:[%s3221_s1 + $0x70] sm:$0xff]  ;;  %v56_v32 = vld [vmem:[%s3221_s1 + $0x48] sm:$0x3]  ;;  %v2246_v37 = vld [vmem:[%s3221_s1 + $0x58] sm:$0x3]  ;;  %vm452_vm4 = vcmask 1042432  }
  0x27   :  { %v58_v18 = vstv %s57_s4  ;;  %v2686_v30 = vsub.s32 %v123_v14, %v125_v12  ;;  %v2251_v38 = vld [vmem:[%s3221_s1 + $0x68] sm:$0x3]  ;;  %v2256_v47 = vld [vmem:[%s3221_s1 + $0x78] sm:$0x3]  ;;  %vm465_vm5 = vcmask 1044480   ;;  %vm534_vm6 = vcmask 1044484   ;;  %vm2756_vm7 = vmor %vm531_vm2, %vm532_vm3 }
  0x28   :  { %v69_v19 = vstv %s2247_s23  ;;  %v59_v22 = vmul.f32 %v58_v18, %v53_v6  ;;  %v84_v24 = vstv %s2252_s24  ;;  %v60_v31 = vmul.f32 %v58_v18, %v54_v13  ;;  %vm535_vm9 = vmor %vm2756_vm7, %vm534_vm6 }
  0x29   :  { %v70_v23 = vmul.f32 %v2243_v7, %v69_v19  ;;  %v99_v25 = vstv %s2257_s25  ;;  %v85_v28 = vmul.f32 %v2248_v10, %v84_v24  ;;  %v61_v34 = vmul.f32 %v58_v18, %v55_v15 }
  0x2a   :  { %v100_v29 = vmul.f32 %v2253_v11, %v99_v25  ;;  %v71_v35 = vmul.f32 %v2244_v16, %v69_v19  ;;  %v72_v36 = vmul.f32 %v2245_v17, %v69_v19  ;;  %v86_v39 = vmul.f32 %v2249_v20, %v84_v24 }
  0x2b   :  { %v74_v33 = vadd.f32 %v70_v23, %v59_v22  ;;  %v87_v40 = vmul.f32 %v2250_v21, %v84_v24  ;;  %v101_v41 = vmul.f32 %v2254_v26, %v99_v25  ;;  %v102_v42 = vmul.f32 %v2255_v27, %v99_v25  ;;  %v883_v21 = vld [vmem:[#allocation5 + $0x40] sm:$0xff]  ;;  %v884_v22 = vld [vmem:[#allocation5 + $0x48] sm:$0xff] }
  0x2c   :  { %v75_v44 = vadd.f32 %v71_v35, %v60_v31  ;;  %v76_v45 = vadd.f32 %v72_v36, %v61_v34  ;;  %v62_v46 = vmul.f32 %v58_v18, %v56_v32  ;;  %v73_v48 = vmul.f32 %v2246_v37, %v69_v19  ;;  %v473_v26 = vld [vmem:[#allocation5 + $0x20] sm:$0xff]  ;;  %v474_v27 = vld [vmem:[#allocation5 + $0x28] sm:$0xff]  ;;  %v475_v31 = vld [vmem:[#allocation5 + $0x30] sm:$0xff] }
  0x2d   :  { %v89_v43 = vadd.f32 %v85_v28, %v74_v33  ;;  %v88_v49 = vmul.f32 %v2251_v38, %v84_v24  ;;  %v103_v54 = vmul.f32 %v2256_v47, %v99_v25  ;;  %v2491_v23 = vpack.c.bf16 %v884_v22, %v883_v21  ;;  %v885_v24 = vld [vmem:[#allocation5 + $0x50] sm:$0xff]  ;;  %v886_v25 = vld [vmem:[#allocation5 + $0x58] sm:$0xff]  ;;  %v2258_v34 = vld [vmem:[%s3223_s3] ss:$0 sm:$0xff] }
  0x2e   :  { %v90_v51 = vadd.f32 %v86_v39, %v75_v44  ;;  %v91_v52 = vadd.f32 %v87_v40, %v76_v45  ;;  %v77_v53 = vadd.f32 %v73_v48, %v62_v46  ;;  %v2494_v28 = vpack.c.bf16 %v886_v25, %v885_v24  ;;  %v476_v32 = vld [vmem:[#allocation5 + $0x38] sm:$0xff]  ;;  %v2748_v24 = vld [vmem:[#allocation5 + $0x70] sm:$0xff] }
  0x2f   :  { %v104_v50 = vadd.f32 %v100_v29, %v89_v43  ;;  %v2479_v29 = vpack.c.bf16 %v474_v27, %v473_v26  ;;  %v2482_v33 = vpack.c.bf16 %v476_v32, %v475_v31  ;;  %v168_v35 = vcombine.high %v2258_v34, %v2258_v34  ;;  %v2750_v25 = vld [vmem:[#allocation5 + $0x78] sm:$0xff] }
  0x30   :  { %v105_v57 = vadd.f32 %v101_v41, %v90_v51  ;;  %v106_v58 = vadd.f32 %v102_v42, %v91_v52  ;;  %v92_v59 = vadd.f32 %v88_v49, %v77_v53  ;;  %v175_v36 = vrot.slane %v2258_v34, %v2686_v30  ;;  %v2764_v34 = vld [vmem:[#allocation5 + $0x18] sm:$0xff] }
  0x31   :  { %v120_v55 = vcombine.high %v104_v50, %v104_v50  ;;  %v127_v56 = vrot.slane %v104_v50, %v2686_v30  ;;  %2480 = vmatpush3.bf16.msra.mxu1 %v2479_v29  ;;  %v182_v37 = vrot.slane %v168_v35, %v2686_v30  ;;  %vm536_vm8 = vcmask 1046534  }
  0x32   :  { %v143_v62 = vrot.slane %v105_v57, %v2686_v30  ;;  %v144_v63 = vcombine.high %v106_v58, %v106_v58  ;;  %v151_v0 = vrot.slane %v106_v58, %v2686_v30  ;;  %v107_v6 = vadd.f32 %v103_v54, %v92_v59  ;;  %2481 = vmatprep.subr.bf16.mxu1 %v2578_v2  ;;  %vm2819_vm11 = vmor %vm535_vm9, %vm536_vm8 }
  0x33   :  { %v134_v60 = vrot.slane %v120_v55, %v2686_v30  ;;  %v135_v61 = vcombine.high %v127_v56, %v127_v56  ;;  %v183_v38 = vcombine.high %v175_v36, %v175_v36  ;;  %v184_v39 = vcombine.high %v182_v37, %v182_v37 }
  0x34   :  { %v158_v5 = vrot.slane %v144_v63, %v2686_v30  ;;  %v159_v7 = vcombine.high %v151_v0, %v151_v0  ;;  %v202_v8 = vcombine.low %v143_v62, %v151_v0  ;;  %v167_v15 = vrot.slane %v107_v6, %v2686_v30 }
  0x35   :  { %v136_v1 = vcombine.high %v134_v60, %v134_v60  ;;  %v185_v3 = vcombine.low %v127_v56, %v135_v61  ;;  %2483 = vmatpush3.bf16.msra.mxu1 %v2482_v33  ;;  %v227_v40 = vcombine.low %v175_v36, %v183_v38  ;;  %v228_v41 = vcombine.low %v182_v37, %v184_v39  ;;  %v2762_v33 = vld [vmem:[#allocation5 + $0x10] sm:$0xff] }
  0x36   :  { %v203_v11 = vcombine.low %v159_v7, %v158_v5  ;;  %v210_v13 = vrot.slane %v202_v8, %v2686_v30  ;;  %v160_v14 = vcombine.high %v158_v5, %v158_v5  ;;  %2484 = vmatprep.subr.bf16.mxu1 %v2578_v2  ;;  %v244_v44 = vcombine.low %v175_v36, %v175_v36 }
  0x37   :  { %v186_v9 = vcombine.low %v134_v60, %v136_v1  ;;  %v193_v10 = vrot.slane %v185_v3, %v2686_v30  ;;  %v235_v42 = vrot.slane %v227_v40, %v2686_v30  ;;  %v242_v43 = vrot.slane %v228_v41, %v2686_v30  ;;  %v2774_v40 = vld [vmem:[#allocation5 + $0x88] sm:$0xff] }
  0x38   :  { %v217_v16 = vrot.slane %v203_v11, %v2686_v30  ;;  %v219_v19 = vcombine.low %v160_v14, %v167_v15  ;;  %v245_v45 = vcombine.low %v183_v38, %v182_v37  ;;  %v252_v47 = vrot.slane %v244_v44, %v2686_v30 }
  0x39   :  { %v200_v12 = vrot.slane %v186_v9, %v2686_v30  ;;  %v243_v46 = vcombine.low %v235_v42, %v242_v43  ;;  %v261_v53 = vcombine.low %v184_v39, %v175_v36  ;;  %v2500_v38 = vpack.c.bf16 %v2750_v25, %v2748_v24  ;;  %v2772_v39 = vld [vmem:[#allocation5 + $0x80] sm:$0xff] }
  0x3a   :  { %v218_v18 = vcombine.low %v210_v13, %v217_v16  ;;  %v226_v20 = vrot.slane %v219_v19, %v2686_v30  ;;  %v259_v48 = vrot.slane %v245_v45, %v2686_v30  ;;  %v2743_v19 = vld [vmem:[#allocation5 + $0x60] sm:$0xff]  ;;  %vm612_vm10 = vcmask 261120  }
  0x3b   :  { %v201_v17 = vcombine.low %v193_v10, %v200_v12  ;;  %v268_v61 = vrot.slane %v261_v53, %v2686_v30  ;;  %v2780_v45 = vld [vmem:[#allocation5 + $0xa0] sm:$0xff]  ;;  %vm1916_vm12 = vcmask 785408   ;;  %vm1918_vm13 = vcmask 779264  }
  0x3c   :  { %v260_v52 = vcombine.low %v252_v47, %v259_v48 }
  0x3d   :  { %2348 = vmatmul.mubr.msk.f32.vlgmr.msra.gmra.mrb[0].mxu0 %vm272_vm1, %v201_v17  ;;  %v2739_v17 = vld [vmem:[#allocation5] sm:$0xff] }
  0x3e   :  { %2350 = vmatprep.mubr.msk.f32.mxu0 %vm2579_vm0, %v2580_v4  ;;  %2492 = vmatpush3.bf16.msra.mxu0 %v2491_v23  ;;  %v2746_v23 = vld [vmem:[#allocation5 + $0x68] sm:$0xff] }
  0x3f   :  { %2493 = vmatprep.subr.bf16.mxu0 %v2578_v2  ;;  %v2497_v37 = vpack.c.bf16 %v2746_v23, %v2743_v19 }
  0x41   :  { %2351 = vmatmul.mubr.msk.f32.gmra.mrb[2].mxu0 %vm272_vm1, %v218_v18  ;;  %v2741_v18 = vld [vmem:[#allocation5 + $0x8] sm:$0xff] }
  0x42   :  { %2353 = vmatprep.mubr.msk.f32.mxu0 %vm2579_vm0, %v2580_v4  ;;  %2495 = vmatpush3.bf16.msra.mxu0 %v2494_v28  ;;  %v2485_v32 = vpack.c.bf16 %v2741_v18, %v2739_v17 }
  0x43   :  { %2496 = vmatprep.subr.bf16.mxu0 %v2578_v2 }
  0x45   :  { %2354 = vmatmul.mubr.msk.f32.gmra.mrb[4].mxu0 %vm272_vm1, %v226_v20 }
  0x46   :  { %2398 = vmatprep.mubr.msk.f32.mxu0 %vm2579_vm0, %v2580_v4 }
 0x110   :  { %v345_v49 = vpop.f32.mrb[0].mxu0 }
 0x111   :  { %v346_v50 = vadd.f32 %v345_v49, %v243_v46  ;;  %v2349_v51 = vpop.f32.mrb[1].mxu0  ;;  %v2782_v46 = vld [vmem:[#allocation5 + $0xa8] sm:$0xff] }
 0x113   :  { %v362_v54 = vcombine.high %v346_v50, %v346_v50  ;;  %v369_v55 = vrot.slane %v346_v50, %v2686_v30  ;;  %v2488_v50 = vpack.c.bf16 %v2764_v34, %v2762_v33 }
 0x114   :  { %v350_v56 = vpop.f32.mrb[2].mxu0 }
 0x115   :  { %v376_v57 = vrot.slane %v362_v54, %v2686_v30  ;;  %v377_v58 = vcombine.high %v369_v55, %v369_v55  ;;  %v351_v59 = vadd.f32 %v350_v56, %v260_v52  ;;  %v2352_v60 = vpop.f32.mrb[3].mxu0  ;;  %v2503_v54 = vpack.c.bf16 %v2774_v40, %v2772_v39  ;;  %v1673_v40 = vld [vmem:[#allocation5 + $0xc0] sm:$0xff] }
 0x117   :  { %v378_v62 = vcombine.high %v376_v57, %v376_v57  ;;  %v404_v63 = vcombine.low %v369_v55, %v377_v58  ;;  %v379_v0 = vcombine.high %v351_v59, %v351_v59  ;;  %v386_v1 = vrot.slane %v351_v59, %v2686_v30 }
 0x118   :  { %v355_v3 = vpop.f32.mrb[4].mxu0  ;;  %v2509_v58 = vpack.c.bf16 %v2782_v46, %v2780_v45 }
 0x119   :  { %v405_v5 = vcombine.low %v376_v57, %v378_v62  ;;  %v393_v6 = vrot.slane %v379_v0, %v2686_v30  ;;  %v394_v7 = vcombine.high %v386_v1, %v386_v1  ;;  %v2355_v8 = vpop.f32.mrb[5].mxu0  ;;  %v412_v9 = vrot.slane %v404_v63, %v2686_v30 }
 0x11a   :  { %v356_v10 = vadd.f32 %v355_v3, %v268_v61  ;;  %v427_v12 = vrot.slane %v386_v1, %v2686_v30 }
 0x11b   :  { %v419_v11 = vrot.slane %v405_v5, %v2686_v30  ;;  %v428_v13 = vcombine.low %v394_v7, %v393_v6  ;;  %v395_v14 = vcombine.high %v393_v6, %v393_v6 }
 0x11c   :  { %v402_v15 = vrot.slane %v356_v10, %v2686_v30  ;;  %v454_v27 = vrot.slane %v427_v12, 5 }
 0x11d   :  { %v420_v16 = vcombine.low %v412_v9, %v419_v11  ;;  %v436_v20 = vrot.slane %v428_v13, %v2686_v30 }
 0x11e   :  { %v403_v21 = vcombine.high %v402_v15, %v402_v15  ;;  %v429_v22 = vcombine.low %v395_v14, %v402_v15 }
 0x11f   :  { %v453_v26 = vrot.slane %v420_v16, 5 }
 0x120   :  { %v443_v28 = vrot.slane %v429_v22, %v2686_v30  ;;  %v451_v29 = vrot.slane %v403_v21, %v2686_v30 }
 0x121   :  { %v463_v35 = vsel %vm452_vm4, 0.0, %v453_v26  ;;  %v455_v36 = vsel %vm452_vm4, %v453_v26, %v454_v27 }
 0x122   :  { %v481_v41 = vcombine.high %v463_v35, %v463_v35  ;;  %v2777_v42 = vrot.slane %v463_v35, %v2686_v30  ;;  %v466_v43 = vsel %vm465_vm5, %v455_v36, 0.0  ;;  %v444_v44 = vcombine.low %v436_v20, %v443_v28 }
 0x123   :  { %v2785_v47 = vrot.slane %v466_v43, %v2686_v30  ;;  %v1085_v48 = vcombine.high %v466_v43, %v466_v43  ;;  %v457_v49 = vrot.slane %v451_v29, 5 }
 0x124   :  { %v2793_v51 = vrot.slane %v481_v41, %v2686_v30  ;;  %v2797_v52 = vcombine.high %v2777_v42, %v2777_v42  ;;  %v456_v53 = vrot.slane %v444_v44, 5  ;;  %v2262_v55 = vrot.slane %v2777_v42, 9 }
 0x125   :  { %v2803_v56 = vrot.slane %v1085_v48, %v2686_v30  ;;  %v2807_v57 = vcombine.high %v2785_v47, %v2785_v47  ;;  %v549_v63 = vrot.slane %v2785_v47, 7 }
 0x126   :  { %v2813_v59 = vcombine.high %v2793_v51, %v2793_v51  ;;  %v887_v60 = vcombine.low %v2797_v52, %v2793_v51  ;;  %v458_v61 = vsel %vm452_vm4, %v456_v53, %v457_v49  ;;  %v464_v0 = vsel %vm452_vm4, 0.0, %v456_v53 }
 0x127   :  { %v467_v1 = vsel %vm465_vm5, %v458_v61, 0.0  ;;  %v540_v3 = vrot.slane %v2797_v52, 7  ;;  %v543_v5 = vrot.slane %v2793_v51, 7  ;;  %v699_v6 = vcombine.low %v2777_v42, %v2797_v52 }
 0x128   :  { %v506_v7 = vcombine.high %v464_v0, %v464_v0  ;;  %v2831_v8 = vrot.slane %v464_v0, %v2686_v30  ;;  %v2834_v9 = vrot.slane %v467_v1, %v2686_v30  ;;  %v1093_v10 = vcombine.high %v467_v1, %v467_v1 }
 0x129   :  { %v888_v11 = vcombine.low %v2813_v59, %v2785_v47  ;;  %v895_v12 = vrot.slane %v887_v60, %v2686_v30  ;;  %v541_v13 = vsel %vm2819_vm11, %v2262_v55, %v540_v3  ;;  %v542_v16 = vrot.slane %v540_v3, 2 }
 0x12a   :  { %v2842_v14 = vrot.slane %v506_v7, %v2686_v30  ;;  %v2270_v15 = vcombine.high %v2785_v47, %v2831_v8  ;;  %v545_v20 = vrot.slane %v543_v5, 2  ;;  %v2847_v21 = vrot.slane %v1093_v10, %v2686_v30 }
 0x12b   :  { %v2850_v22 = vrot.slane %v888_v11, %v2686_v30  ;;  %v546_v26 = vrot.slane %v2813_v59, 7  ;;  %v551_v27 = vrot.slane %v549_v63, 2  ;;  %v544_v31 = vsel %vm2819_vm11, %v542_v16, %v543_v5 }
 0x12c   :  { %v2855_v28 = vcombine.high %v2842_v14, %v2842_v14  ;;  %v912_v29 = vrot.slane %v2270_v15, %v2686_v30  ;;  %v552_v35 = vrot.slane %v2807_v57, 7  ;;  %v570_v44 = vcombine.low %v541_v13, %v544_v31 }
 0x12d   :  { %v903_v36 = vcombine.low %v895_v12, %v2850_v22  ;;  %v547_v41 = vsel %vm2819_vm11, %v545_v20, %v546_v26  ;;  %v548_v43 = vrot.slane %v546_v26, 2  ;;  %v1102_v55 = vrot.slane %v2803_v56, 7 }
 0x12e   :  { %v905_v48 = vcombine.low %v2842_v14, %v2855_v28  ;;  %v553_v49 = vsel %vm2819_vm11, %v551_v27, %v552_v35  ;;  %v1101_v53 = vrot.slane %v552_v35, 2  ;;  %v578_v61 = vrot.slane %v570_v44, %v2686_v30 }
 0x12f   :  { %2399 = vmatmul.mubr.msk.f32.vlgmr.msra.gmra.mrb[6].mxu0 %vm612_vm10, %v903_v36  ;;  %v550_v60 = vsel %vm2819_vm11, %v548_v43, %v549_v63  ;;  %v1107_v0 = vcombine.low %v544_v31, %v547_v41  ;;  %v2875_v1 = vcombine.high %v2834_v9, %v2834_v9  ;;  %v2892_v13 = vcombine.high %v2831_v8, %v2831_v8 }
 0x130   :  { %2401 = vmatprep.mubr.msk.f32.mxu0 %vm2579_vm0, %v2580_v4  ;;  %v919_v3 = vrot.slane %v905_v48, %v2686_v30  ;;  %v571_v5 = vcombine.low %v547_v41, %v550_v60  ;;  %v1103_v7 = vsel %vm2819_vm11, %v1101_v53, %v1102_v55  ;;  %v1108_v10 = vcombine.low %v550_v60, %v553_v49 }
 0x131   :  { %v1115_v63 = vrot.slane %v1107_v0, %v2686_v30  ;;  %v1495_v11 = vcombine.low %v553_v49, %v1103_v7  ;;  %2498 = vmatpush3.bf16.msra.mxu0 %v2497_v37  ;;  %v921_v12 = vcombine.low %v2834_v9, %v2875_v1  ;;  %v2263_v26 = vrot.slane %v2831_v8, 9 }
 0x132   :  { %v920_v15 = vcombine.low %v912_v29, %v919_v3  ;;  %v2895_v16 = vrot.slane %v571_v5, %v2686_v30  ;;  %v1122_v20 = vrot.slane %v1108_v10, %v2686_v30  ;;  %2499 = vmatprep.subr.bf16.mxu0 %v2578_v2  ;;  %v556_v37 = vrot.slane %v2892_v13, 7  ;;  %v1485_v3 = vld [vmem:[#allocation5 + $0xb0] sm:$0xff]  ;;  %v1486_v5 = vld [vmem:[#allocation5 + $0xb8] sm:$0xff] }
 0x133   :  { %v2901_v19 = vrot.slane %v1495_v11, %v2686_v30  ;;  %v2904_v23 = vrot.slane %v921_v12, %v2686_v30  ;;  %v559_v27 = vrot.slane %v2842_v14, 7  ;;  %v562_v31 = vrot.slane %v2855_v28, 7 }
 0x134   :  { %2402 = vmatmul.mubr.msk.f32.gmra.mrb[8].mxu0 %vm612_vm10, %v920_v15  ;;  %v586_v29 = vcombine.low %v578_v61, %v2895_v16  ;;  %v1123_v35 = vcombine.low %v1115_v63, %v1122_v20  ;;  %v565_v36 = vrot.slane %v2834_v9, 7  ;;  %v557_v43 = vsel %vm2819_vm11, %v2263_v26, %v556_v37 }
 0x135   :  { %v1503_v41 = vcombine.low %v2895_v16, %v2901_v19  ;;  %2404 = vmatprep.mubr.msk.f32.mxu0 %vm2579_vm0, %v2580_v4  ;;  %v558_v44 = vrot.slane %v556_v37, 2  ;;  %v561_v48 = vrot.slane %v559_v27, 2  ;;  %2501 = vmatpush3.bf16.msra.mxu0 %v2500_v38  ;;  %v587_v53 = vcombine.low %v553_v49, %v557_v43  ;;  %v1675_v19 = vld [vmem:[#allocation5 + $0xd0] sm:$0xff] }
 0x136   :  { %2365 = vmatmul.mubr.msk.f32.vlgmr.msra.gmra.mrb[0].mxu1 %vm612_vm10, %v586_v29  ;;  %v564_v60 = vrot.slane %v562_v31, 2  ;;  %v567_v61 = vrot.slane %v565_v36, 2  ;;  %v568_v0 = vrot.slane %v2875_v1, 7  ;;  %2508 = vmatprep.subr.bf16.mxu0 %v2578_v2  ;;  %v700_v38 = vcombine.low %v2793_v51, %v2813_v59 }
 0x137   :  { %2486 = vmatpush3.bf16.msra.mxu1 %v2485_v32  ;;  %2367 = vmatprep.mubr.msk.f32.mxu1 %vm2579_vm0, %v2580_v4  ;;  %v560_v24 = vsel %vm2819_vm11, %v558_v44, %v559_v27  ;;  %v563_v25 = vsel %vm2819_vm11, %v561_v48, %v562_v31  ;;  %v1105_v32 = vrot.slane %v2847_v21, 7  ;;  %v595_v10 = vrot.slane %v587_v53, %v2686_v30 }
 0x138   :  { %2405 = vmatmul.mubr.msk.f32.gmra.mrb[10].mxu0 %vm612_vm10, %v2904_v23  ;;  %v588_v49 = vcombine.low %v560_v24, %v563_v25  ;;  %2487 = vmatprep.subr.bf16.mxu1 %v2578_v2  ;;  %v566_v17 = vsel %vm2819_vm11, %v564_v60, %v565_v36  ;;  %v1104_v18 = vrot.slane %v568_v0, 2  ;;  %v569_v51 = vsel %vm2819_vm11, %v567_v61, %v568_v0 }
 0x139   :  { %2415 = vmatprep.mubr.msk.f32.mxu0 %vm2579_vm0, %v2580_v4  ;;  %v1124_v59 = vcombine.low %v1103_v7, %v560_v24  ;;  %v1125_v63 = vcombine.low %v563_v25, %v566_v17  ;;  %v604_v12 = vcombine.low %v566_v17, %v569_v51  ;;  %v716_v20 = vcombine.low %v2785_v47, %v2831_v8  ;;  %v1303_v17 = vld [vmem:[#allocation5 + $0x90] sm:$0xff] }
 0x13a   :  { %v602_v11 = vrot.slane %v588_v49, %v2686_v30  ;;  %v2949_v15 = vsel %vm2819_vm11, %v1104_v18, %v1105_v32  ;;  %v707_v26 = vrot.slane %v699_v6, %v2686_v30  ;;  %v2512_v27 = vpack.c.bf16 %v1486_v5, %v1485_v3  ;;  %v1304_v18 = vld [vmem:[#allocation5 + $0x98] sm:$0xff] }
 0x13b   :  { %2489 = vmatpush3.bf16.msra.mxu1 %v2488_v50  ;;  %v1132_v7 = vrot.slane %v1124_v59, %v2686_v30  ;;  %v1139_v37 = vrot.slane %v1125_v63, %v2686_v30  ;;  %v2965_v8 = vrot.slane %v700_v38, %v2686_v30  ;;  %v717_v42 = vcombine.low %v2892_v13, %v2842_v14 }
 0x13c   :  { %v603_v29 = vcombine.low %v595_v10, %v602_v11  ;;  %2416 = vmatmul.mubr.msk.f32.vlgmr.msra.gmra.mrb[12].mxu0 %vm612_vm10, %v1123_v35  ;;  %2502 = vmatprep.subr.bf16.mxu1 %v2578_v2  ;;  %v1141_v34 = vcombine.low %v569_v51, %v2949_v15  ;;  %v724_v50 = vrot.slane %v716_v20, %v2686_v30  ;;  %v1489_v45 = vrot.slane %v1102_v55, 2 }
 0x13d   :  { %2418 = vmatprep.mubr.msk.f32.mxu0 %vm2579_vm0, %v2580_v4  ;;  %v1140_v33 = vcombine.low %v1132_v7, %v1139_v37  ;;  %2510 = vmatpush3.bf16.msra.mxu0 %v2509_v58  ;;  %v731_v52 = vrot.slane %v717_v42, %v2686_v30  ;;  %v733_v6 = vcombine.low %v2855_v28, %v2834_v9  ;;  %v1492_v53 = vrot.slane %v1105_v32, 2 }
 0x13e   :  { %2368 = vmatmul.mubr.msk.f32.gmra.mrb[2].mxu1 %vm612_vm10, %v603_v29  ;;  %2511 = vmatprep.subr.bf16.mxu0 %v2578_v2  ;;  %v1487_v13 = vcombine.high %v2803_v56, %v2803_v56  ;;  %v611_v46 = vrot.slane %v604_v12, %v2686_v30  ;;  %v1305_v58 = vcombine.low %v2785_v47, %v2807_v57 }
 0x13f   :  { %2370 = vmatprep.mubr.msk.f32.mxu1 %vm2579_vm0, %v2580_v4  ;;  %v2992_v31 = vcombine.high %v2847_v21, %v2847_v21  ;;  %v1314_v9 = vcombine.low %v2803_v56, %v2842_v14  ;;  %v732_v28 = vcombine.low %v724_v50, %v731_v52  ;;  %v740_v55 = vrot.slane %v733_v6, %v2686_v30 }
 0x140   :  { %2419 = vmatmul.mubr.msk.f32.gmra.mrb[14].mxu0 %vm612_vm10, %v1140_v33  ;;  %v1490_v35 = vrot.slane %v1487_v13, 7  ;;  %v1677_v36 = vcombine.low %v2807_v57, %v2803_v56  ;;  %v1148_v47 = vrot.slane %v1141_v34, %v2686_v30  ;;  %v1312_v43 = vrot.slane %v1305_v58, %v2686_v30 }
 0x141   :  { %2421 = vmatprep.mubr.msk.f32.mxu0 %vm2579_vm0, %v2580_v4  ;;  %2513 = vmatpush3.bf16.msra.mxu0 %v2512_v27  ;;  %v1321_v44 = vrot.slane %v1314_v9, %v2686_v30  ;;  %v2283_v57 = vcombine.high %v2803_v56, %v2842_v14  ;;  %v1493_v24 = vrot.slane %v2992_v31, 7  ;;  %v715_v49 = vcombine.low %v707_v26, %v2965_v8 }
 0x142   :  { %2371 = vmatmul.mubr.msk.f32.gmra.mrb[4].mxu1 %vm612_vm10, %v611_v46  ;;  %v1491_v48 = vsel %vm2819_vm11, %v1489_v45, %v1490_v35  ;;  %v1684_v60 = vrot.slane %v1677_v36, %v2686_v30  ;;  %v1313_v0 = vcombine.low %v2965_v8, %v1312_v43  ;;  %v1323_v10 = vcombine.low %v2875_v1, %v2847_v21 }
 0x143   :  { %2381 = vmatprep.mubr.msk.f32.mxu1 %vm2579_vm0, %v2580_v4  ;;  %v1504_v61 = vcombine.low %v1491_v48, %v563_v25  ;;  %v1322_v38 = vcombine.low %v1321_v44, %v740_v55  ;;  %v1693_v3 = vrot.slane %v2283_v57, %v2686_v30  ;;  %v2506_v25 = vpack.c.bf16 %v1304_v18, %v1303_v17 }
 0x144   :  { %2422 = vmatmul.mubr.msk.f32.gmra.mrb[16].mxu0 %vm612_vm10, %v1148_v47  ;;  %v1685_v32 = vcombine.low %v2850_v22, %v1684_v60  ;;  %v1494_v5 = vsel %vm2819_vm11, %v1492_v53, %v1493_v24  ;;  %v1330_v51 = vrot.slane %v1323_v10, %v2686_v30 }
 0x145   :  { %2449 = vmatprep.mubr.msk.f32.mxu0 %vm2579_vm0, %v2580_v4  ;;  %v1511_v56 = vrot.slane %v1504_v61, %v2686_v30  ;;  %v1694_v14 = vcombine.low %v1693_v3, %v2904_v23  ;;  %v1513_v39 = vcombine.low %v2949_v15, %v1494_v5  ;;  %v1676_v23 = vld [vmem:[#allocation5 + $0xd8] sm:$0xff] }
 0x146   :  { %2382 = vmatmul.mubr.msk.f32.vlgmr.msra.gmra.mrb[0].mxu1 %vm612_vm10, %v715_v49 }
 0x147   :  { %2504 = vmatpush3.bf16.msra.mxu1 %v2503_v54  ;;  %2384 = vmatprep.mubr.msk.f32.mxu1 %vm2579_vm0, %v2580_v4  ;;  %v1512_v22 = vcombine.low %v1511_v56, %v611_v46  ;;  %v1674_v54 = vld [vmem:[#allocation5 + $0xc8] sm:$0xff]  ;;  %v1520_v62 = vrot.slane %v1513_v39, %v2686_v30 }
 0x148   :  { %2505 = vmatprep.subr.bf16.mxu1 %v2578_v2  ;;  %2450 = vmatmul.mubr.msk.f32.vlgmr.msra.gmra.mrb[18].mxu0 %vm612_vm10, %v1503_v41  ;;  %v2515_v16 = vpack.c.bf16 %v1674_v54, %v1673_v40  ;;  %v2518_v41 = vpack.c.bf16 %v1676_v23, %v1675_v19 }
 0x149   :  { %2452 = vmatprep.mubr.msk.f32.mxu0 %vm2579_vm0, %v2580_v4 }
 0x14a   :  { %2385 = vmatmul.mubr.msk.f32.gmra.mrb[2].mxu1 %vm612_vm10, %v732_v28 }
 0x14b   :  { %2507 = vmatpush3.bf16.msra.mxu1 %v2506_v25  ;;  %2387 = vmatprep.mubr.msk.f32.mxu1 %vm2579_vm0, %v2580_v4 }
 0x14c   :  { %2453 = vmatmul.mubr.msk.f32.gmra.mrb[20].mxu0 %vm612_vm10, %v1512_v22  ;;  %2514 = vmatprep.subr.bf16.mxu1 %v2578_v2 }
 0x14d   :  { %2455 = vmatprep.mubr.msk.f32.mxu0 %vm2579_vm0, %v2580_v4 }
 0x14e   :  { %2388 = vmatmul.mubr.msk.f32.gmra.mrb[4].mxu1 %vm612_vm10, %v740_v55 }
 0x14f   :  { %2432 = vmatprep.mubr.msk.f32.mxu1 %vm2579_vm0, %v2580_v4 }
 0x150   :  { %2456 = vmatmul.mubr.msk.f32.gmra.mrb[22].mxu0 %vm612_vm10, %v1520_v62 }
 0x152   :  { %2433 = vmatmul.mubr.msk.f32.vlgmr.msra.gmra.mrb[6].mxu1 %vm612_vm10, %v1313_v0 }
 0x153   :  { %2516 = vmatpush3.bf16.msra.mxu1 %v2515_v16  ;;  %2435 = vmatprep.mubr.msk.f32.mxu1 %vm2579_vm0, %v2580_v4 }
 0x154   :  { %2517 = vmatprep.subr.bf16.mxu1 %v2578_v2  ;;  %v1695_v2 = vcombine.low %v2847_v21, %v2992_v31 }
 0x156   :  { %2436 = vmatmul.mubr.msk.f32.gmra.mrb[8].mxu1 %vm612_vm10, %v1322_v38  ;;  %v1702_v1 = vrot.slane %v1695_v2, %v2686_v30 }
 0x157   :  { %2519 = vmatpush3.bf16.msra.mxu1 %v2518_v41  ;;  %2438 = vmatprep.mubr.msk.f32.mxu1 %vm2579_vm0, %v2580_v4 }
 0x15a   :  { %2439 = vmatmul.mubr.msk.f32.gmra.mrb[10].mxu1 %vm612_vm10, %v1330_v51 }
 0x15b   :  { %2466 = vmatprep.mubr.msk.f32.mxu1 %vm2579_vm0, %v2580_v4 }
 0x15e   :  { %2467 = vmatmul.mubr.msk.f32.vlgmr.msra.gmra.mrb[12].mxu1 %vm612_vm10, %v1685_v32 }
 0x15f   :  { %2469 = vmatprep.mubr.msk.f32.mxu1 %vm2579_vm0, %v2580_v4 }
 0x162   :  { %2470 = vmatmul.mubr.msk.f32.gmra.mrb[14].mxu1 %vm612_vm10, %v1694_v14 }
 0x163   :  { %2472 = vmatprep.mubr.msk.f32.mxu1 %vm2579_vm0, %v2580_v4 }
 0x166   :  { %2473 = vmatmul.mubr.msk.f32.gmra.mrb[16].mxu1 %vm612_vm10, %v1702_v1 }
 0x202   :  { %v1001_v59 = vpop.f32.mrb[6].mxu0 }
 0x203   :  { %v2400_v63 = vpop.f32.mrb[7].mxu0  ;;  %v1018_v37 = vcombine.high %v1001_v59, %v1001_v59  ;;  %v1025_v8 = vrot.slane %v1001_v59, %v2686_v30 }
 0x205   :  { %v1032_v4 = vrot.slane %v1018_v37, %v2686_v30  ;;  %v1033_v31 = vcombine.high %v1025_v8, %v1025_v8 }
 0x207   :  { %v1006_v11 = vpop.f32.mrb[8].mxu0  ;;  %v1034_v9 = vcombine.high %v1032_v4, %v1032_v4 }
 0x208   :  { %v2403_v12 = vpop.f32.mrb[9].mxu0  ;;  %v1035_v29 = vcombine.high %v1006_v11, %v1006_v11  ;;  %v1042_v50 = vrot.slane %v1006_v11, %v2686_v30 }
 0x20a   :  { %v1049_v52 = vrot.slane %v1035_v29, %v2686_v30  ;;  %v1050_v53 = vcombine.high %v1042_v50, %v1042_v50 }
 0x20b   :  { %v1011_v15 = vpop.f32.mrb[10].mxu0 }
 0x20c   :  { %v2406_v20 = vpop.f32.mrb[11].mxu0  ;;  %v1058_v28 = vrot.slane %v1011_v15, %v2686_v30  ;;  %v1051_v60 = vcombine.high %v1049_v52, %v1049_v52 }
 0x20e   :  { %v1059_v32 = vcombine.high %v1058_v28, %v1058_v28 }
 0x20f   :  { %v1221_v26 = vpop.f32.mrb[12].mxu0 }
 0x210   :  { %v2417_v7 = vpop.f32.mrb[13].mxu0  ;;  %v1238_v33 = vcombine.high %v1221_v26, %v1221_v26  ;;  %v1245_v55 = vrot.slane %v1221_v26, %v2686_v30 }
 0x212   :  { %v1252_v36 = vrot.slane %v1238_v33, %v2686_v30  ;;  %v1253_v3 = vcombine.high %v1245_v55, %v1245_v55 }
 0x213   :  { %v1226_v27 = vpop.f32.mrb[14].mxu0 }
 0x214   :  { %v2420_v21 = vpop.f32.mrb[15].mxu0  ;;  %v1255_v6 = vcombine.high %v1226_v27, %v1226_v27  ;;  %v1262_v57 = vrot.slane %v1226_v27, %v2686_v30  ;;  %v1254_v22 = vcombine.high %v1252_v36, %v1252_v36 }
 0x216   :  { %v1269_v61 = vrot.slane %v1255_v6, %v2686_v30  ;;  %v1270_v62 = vcombine.high %v1262_v57, %v1262_v57 }
 0x217   :  { %v1231_v42 = vpop.f32.mrb[16].mxu0 }
 0x218   :  { %v2423_v34 = vpop.f32.mrb[17].mxu0  ;;  %v1278_v39 = vrot.slane %v1231_v42, %v2686_v30  ;;  %v1271_v10 = vcombine.high %v1269_v61, %v1269_v61 }
 0x219   :  { %v813_v13 = vpop.f32.mrb[0].mxu1 }
 0x21a   :  { %v830_v45 = vcombine.high %v813_v13, %v813_v13  ;;  %v837_v46 = vrot.slane %v813_v13, %v2686_v30  ;;  %v2383_v58 = vpop.f32.mrb[1].mxu1  ;;  %v1279_v26 = vcombine.high %v1278_v39, %v1278_v39 }
 0x21b   :  { %v1593_v35 = vpop.f32.mrb[18].mxu0 }
 0x21c   :  { %v844_v47 = vrot.slane %v830_v45, %v2686_v30  ;;  %v845_v43 = vcombine.high %v837_v46, %v837_v46  ;;  %v1070_v44 = vadd.f32 %v1025_v8, %v837_v46  ;;  %v2451_v48 = vpop.f32.mrb[19].mxu0  ;;  %v1610_v11 = vcombine.high %v1593_v35, %v1593_v35 }
 0x21d   :  { %v818_v0 = vpop.f32.mrb[2].mxu1  ;;  %v1617_v29 = vrot.slane %v1593_v35, %v2686_v30 }
 0x21e   :  { %v846_v24 = vcombine.high %v844_v47, %v844_v47  ;;  %v1071_v38 = vadd.f32 %v1033_v31, %v845_v43  ;;  %v1072_v49 = vadd.f32 %v1032_v4, %v844_v47  ;;  %v847_v17 = vcombine.high %v818_v0, %v818_v0  ;;  %v2386_v18 = vpop.f32.mrb[3].mxu1 }
 0x21f   :  { %v854_v56 = vrot.slane %v818_v0, %v2686_v30  ;;  %v1598_v14 = vpop.f32.mrb[20].mxu0  ;;  %v1290_v25 = vadd.f32 %v1245_v55, %v1070_v44  ;;  %v1624_v45 = vrot.slane %v1610_v11, %v2686_v30  ;;  %v1625_v35 = vcombine.high %v1617_v29, %v1617_v29 }
 0x220   :  { %v1073_v5 = vadd.f32 %v1034_v9, %v846_v24  ;;  %v861_v40 = vrot.slane %v847_v17, %v2686_v30  ;;  %v2454_v54 = vpop.f32.mrb[21].mxu0  ;;  %v1291_v41 = vadd.f32 %v1253_v3, %v1071_v38  ;;  %v1292_v12 = vadd.f32 %v1252_v36, %v1072_v49 }
 0x221   :  { %v862_v16 = vcombine.high %v854_v56, %v854_v56  ;;  %v1074_v19 = vadd.f32 %v1042_v50, %v854_v56  ;;  %v823_v23 = vpop.f32.mrb[4].mxu1  ;;  %v1627_v46 = vcombine.high %v1598_v14, %v1598_v14  ;;  %v1634_v36 = vrot.slane %v1598_v14, %v2686_v30 }
 0x222   :  { %v863_v51 = vcombine.high %v861_v40, %v861_v40  ;;  %v1076_v2 = vadd.f32 %v1049_v52, %v861_v40  ;;  %v870_v1 = vrot.slane %v823_v23, %v2686_v30  ;;  %v2389_v59 = vpop.f32.mrb[5].mxu1  ;;  %v1293_v15 = vadd.f32 %v1254_v22, %v1073_v5 }
 0x223   :  { %v1075_v63 = vadd.f32 %v1050_v53, %v862_v16  ;;  %v1603_v20 = vpop.f32.mrb[22].mxu0  ;;  %v1294_v4 = vadd.f32 %v1262_v57, %v1074_v19  ;;  %v1626_v57 = vcombine.high %v1624_v45, %v1624_v45  ;;  %v1642_v54 = vcombine.high %v1634_v36, %v1634_v36 }
 0x224   :  { %v1077_v7 = vadd.f32 %v1051_v60, %v863_v51  ;;  %v871_v37 = vcombine.high %v870_v1, %v870_v1  ;;  %v1078_v27 = vadd.f32 %v1058_v28, %v870_v1  ;;  %v2457_v21 = vpop.f32.mrb[23].mxu0  ;;  %v1296_v33 = vadd.f32 %v1269_v61, %v1076_v2 }
 0x225   :  { %v1403_v8 = vpop.f32.mrb[6].mxu1  ;;  %v1295_v42 = vadd.f32 %v1270_v62, %v1075_v63  ;;  %v1641_v61 = vrot.slane %v1627_v46, %v2686_v30 }
 0x226   :  { %v1079_v34 = vadd.f32 %v1059_v32, %v871_v37  ;;  %v1420_v50 = vcombine.high %v1403_v8, %v1403_v8  ;;  %v1427_v52 = vrot.slane %v1403_v8, %v2686_v30  ;;  %v2434_v6 = vpop.f32.mrb[7].mxu1  ;;  %v1297_v13 = vadd.f32 %v1271_v10, %v1077_v7 }
 0x227   :  { %v1298_v58 = vadd.f32 %v1278_v39, %v1078_v27  ;;  %v1650_v32 = vrot.slane %v1603_v20, %v2686_v30  ;;  %v1643_v62 = vcombine.high %v1641_v61, %v1641_v61 }
 0x228   :  { %v1434_v31 = vrot.slane %v1420_v50, %v2686_v30  ;;  %v1435_v9 = vcombine.high %v1427_v52, %v1427_v52  ;;  %v1472_v28 = vadd.f32 %v1427_v52, %v1290_v25  ;;  %v1299_v55 = vadd.f32 %v1279_v26, %v1079_v34 }
 0x229   :  { %v1408_v47 = vpop.f32.mrb[8].mxu1  ;;  %v1651_v2 = vcombine.high %v1650_v32, %v1650_v32 }
 0x22a   :  { %v1436_v43 = vcombine.high %v1434_v31, %v1434_v31  ;;  %v1473_v44 = vadd.f32 %v1435_v9, %v1291_v41  ;;  %v1474_v48 = vadd.f32 %v1434_v31, %v1292_v12  ;;  %v1437_v53 = vcombine.high %v1408_v47, %v1408_v47  ;;  %v2437_v60 = vpop.f32.mrb[9].mxu1 }
 0x22b   :  { %v1444_v0 = vrot.slane %v1408_v47, %v2686_v30  ;;  %v1662_v24 = vadd.f32 %v1617_v29, %v1472_v28 }
 0x22c   :  { %v1475_v38 = vadd.f32 %v1436_v43, %v1293_v15  ;;  %v1451_v49 = vrot.slane %v1437_v53, %v2686_v30  ;;  %v1663_v17 = vadd.f32 %v1625_v35, %v1473_v44  ;;  %v1664_v18 = vadd.f32 %v1624_v45, %v1474_v48 }
 0x22d   :  { %v1452_v3 = vcombine.high %v1444_v0, %v1444_v0  ;;  %v1476_v56 = vadd.f32 %v1444_v0, %v1294_v4  ;;  %v1413_v14 = vpop.f32.mrb[10].mxu1 }
 0x22e   :  { %v1453_v25 = vcombine.high %v1451_v49, %v1451_v49  ;;  %v1478_v22 = vadd.f32 %v1451_v49, %v1296_v33  ;;  %v1460_v5 = vrot.slane %v1413_v14, %v2686_v30  ;;  %v2440_v39 = vpop.f32.mrb[11].mxu1  ;;  %v1665_v40 = vadd.f32 %v1626_v57, %v1475_v38 }
 0x22f   :  { %v1477_v16 = vadd.f32 %v1452_v3, %v1295_v42  ;;  %v1666_v19 = vadd.f32 %v1634_v36, %v1476_v56 }
 0x230   :  { %v1479_v23 = vadd.f32 %v1453_v25, %v1297_v13  ;;  %v1461_v41 = vcombine.high %v1460_v5, %v1460_v5  ;;  %v1480_v10 = vadd.f32 %v1460_v5, %v1298_v58  ;;  %v1668_v51 = vadd.f32 %v1641_v61, %v1478_v22 }
 0x231   :  { %v1775_v1 = vpop.f32.mrb[12].mxu1  ;;  %v1667_v59 = vadd.f32 %v1642_v54, %v1477_v16 }
 0x232   :  { %v1481_v63 = vadd.f32 %v1461_v41, %v1299_v55  ;;  %v1792_v11 = vcombine.high %v1775_v1, %v1775_v1  ;;  %v1799_v12 = vrot.slane %v1775_v1, %v2686_v30  ;;  %v2468_v15 = vpop.f32.mrb[13].mxu1  ;;  %v1669_v20 = vadd.f32 %v1643_v62, %v1479_v23 }
 0x233   :  { %v1670_v26 = vadd.f32 %v1650_v32, %v1480_v10 }
 0x234   :  { %v1806_v7 = vrot.slane %v1792_v11, %v2686_v30  ;;  %v1807_v37 = vcombine.high %v1799_v12, %v1799_v12  ;;  %v3101_v27 = vadd.f32 %v1799_v12, %v1662_v24  ;;  %v1671_v21 = vadd.f32 %v1651_v2, %v1481_v63 }
 0x235   :  { %v1780_v29 = vpop.f32.mrb[14].mxu1 }
 0x236   :  { %v1808_v8 = vcombine.high %v1806_v7, %v1806_v7  ;;  %v3103_v4 = vadd.f32 %v1807_v37, %v1663_v17  ;;  %v3105_v42 = vadd.f32 %v1806_v7, %v1664_v18  ;;  %v2471_v33 = vpop.f32.mrb[15].mxu1  ;;  %v1809_v34 = vcombine.high %v1780_v29, %v1780_v29 }
 0x237   :  { %v1816_v50 = vrot.slane %v1780_v29, %v2686_v30  ;;  %v1933_v13 = vmul.f32 %v3101_v27, %v3101_v27 }
 0x238   :  { %v3108_v52 = vadd.f32 %v1808_v8, %v1665_v40  ;;  %v1864_v6 = vcombine.low %v3101_v27, %v3103_v4  ;;  %v1934_v45 = vmul.f32 %v3103_v4, %v3103_v4  ;;  %v1823_v46 = vrot.slane %v1809_v34, %v2686_v30 }
 0x239   :  { %v1824_v58 = vcombine.high %v1816_v50, %v1816_v50  ;;  %v3117_v31 = vadd.f32 %v1816_v50, %v1666_v19  ;;  %v1785_v9 = vpop.f32.mrb[16].mxu1  ;;  %v1935_v55 = vmul.f32 %v3105_v42, %v3105_v42 }
 0x23a   :  { %v1865_v28 = vcombine.low %v3105_v42, %v3108_v52  ;;  %v1936_v35 = vmul.f32 %v3108_v52, %v3108_v52  ;;  %v1953_v36 = vcombine.low %v1933_v13, %v1934_v45  ;;  %v2474_v47 = vpop.f32.mrb[17].mxu1  ;;  %v1872_v43 = vrot.slane %v1864_v6, %v2686_v30 }
 0x23b   :  { %v1825_v44 = vcombine.high %v1823_v46, %v1823_v46  ;;  %v3126_v48 = vadd.f32 %v1824_v58, %v1667_v59  ;;  %v3128_v53 = vadd.f32 %v1823_v46, %v1668_v51  ;;  %v1887_v61 = vrot.slane %v3117_v31, %v2686_v30 }
 0x23c   :  { %v1879_v60 = vrot.slane %v1865_v28, %v2686_v30  ;;  %v1954_v57 = vcombine.low %v1935_v55, %v1936_v35  ;;  %v1937_v0 = vmul.f32 %v3117_v31, %v3117_v31  ;;  %v1961_v24 = vrot.slane %v1953_v36, %v2686_v30 }
 0x23d   :  { %v3136_v38 = vadd.f32 %v1825_v44, %v1669_v20  ;;  %v1888_v49 = vcombine.low %v3126_v48, %v3128_v53  ;;  %v1938_v17 = vmul.f32 %v3126_v48, %v3126_v48  ;;  %v1939_v3 = vmul.f32 %v3128_v53, %v3128_v53 }
 0x23e   :  { %v1880_v18 = vcombine.low %v1872_v43, %v1879_v60  ;;  %v1968_v32 = vrot.slane %v1954_v57, %v2686_v30  ;;  %v1976_v56 = vrot.slane %v1937_v0, %v2686_v30  ;;  %v1832_v14 = vrot.slane %v1785_v9, %v2686_v30 }
 0x23f   :  { %v1919_v5 = vsel %vm1918_vm13, %v1887_v61, 0.0  ;;  %v1977_v39 = vcombine.low %v1938_v17, %v1939_v3  ;;  %v1940_v16 = vmul.f32 %v3136_v38, %v3136_v38  ;;  %v1896_v1 = vrot.slane %v1888_v49, %v2686_v30 }
 0x240   :  { %v1969_v25 = vcombine.low %v1961_v24, %v1968_v32  ;;  %v1917_v22 = vsel %vm1916_vm12, %v1880_v18, 0.0  ;;  %v1833_v54 = vcombine.high %v1832_v14, %v1832_v14  ;;  %v3149_v62 = vadd.f32 %v1832_v14, %v1670_v26 }
 0x241   :  { %v1920_v40 = vadd.f32 %v1919_v5, %v1917_v22  ;;  %v2006_v23 = vsel %vm1918_vm13, %v1976_v56, 0.0  ;;  %v1985_v12 = vrot.slane %v1977_v39, %v2686_v30 }
 0x242   :  { %v2005_v19 = vsel %vm1916_vm12, %v1969_v25, 0.0  ;;  %v3155_v10 = vadd.f32 %v1833_v54, %v1671_v21  ;;  %v1889_v51 = vcombine.low %v3136_v38, %v3149_v62  ;;  %v1941_v2 = vmul.f32 %v3149_v62, %v3149_v62 }
 0x243   :  { %v2007_v41 = vadd.f32 %v2006_v23, %v2005_v19 }
 0x244   :  { %v1903_v59 = vrot.slane %v1889_v51, %v2686_v30  ;;  %v1942_v63 = vmul.f32 %v3155_v10, %v3155_v10  ;;  %v1978_v11 = vcombine.low %v1940_v16, %v1941_v2  ;;  %v1911_v20 = vrot.slane %v3155_v10, %v2686_v30 }
 0x246   :  { %v1904_v15 = vcombine.low %v1896_v1, %v1903_v59  ;;  %v1992_v26 = vrot.slane %v1978_v11, %v2686_v30  ;;  %v2000_v21 = vrot.slane %v1942_v63, %v2686_v30  ;;  %v1923_v8 = vsel %vm1918_vm13, %v1911_v20, 0.0 }
 0x248   :  { %v1921_v7 = vsel %vm1916_vm12, %v1904_v15, 0.0  ;;  %v1993_v37 = vcombine.low %v1985_v12, %v1992_v26  ;;  %v2010_v6 = vsel %vm1918_vm13, %v2000_v21, 0.0 }
 0x249   :  { %v1922_v29 = vadd.f32 %v1921_v7, %v1920_v40 }
 0x24a   :  { %v2008_v33 = vsel %vm1916_vm12, %v1993_v37, 0.0 }
 0x24b   :  { %v1924_v34 = vadd.f32 %v1923_v8, %v1922_v29  ;;  %v2009_v50 = vadd.f32 %v2008_v33, %v2007_v41 }
 0x24d   :  { %v1925_v13 = vrot.slane %v1924_v34, 4  ;;  %v2011_v45 = vadd.f32 %v2010_v6, %v2009_v50 }
 0x24f   :  { %v1926_v46 = vadd.f32 %v1925_v13, %v1924_v34  ;;  %v2012_v58 = vrot.slane %v2011_v45, 4 }
 0x251   :  { %v1927_v9 = vrot.slane %v1926_v46, 2  ;;  %v2013_v28 = vadd.f32 %v2012_v58, %v2011_v45 }
 0x253   :  { %v1928_v55 = vadd.f32 %v1927_v9, %v1926_v46  ;;  %v2014_v35 = vrot.slane %v2013_v28, 2 }
 0x255   :  { %v1929_v36 = vrot.slane %v1928_v55, 1  ;;  %v2015_v47 = vadd.f32 %v2014_v35, %v2013_v28 }
 0x257   :  { %v1930_v43 = vadd.f32 %v1929_v36, %v1928_v55  ;;  %v2016_v44 = vrot.slane %v2015_v47, 1 }
 0x259   :  { %v1932_v60 = vmul.f32 0.05, %v1930_v43  ;;  %v2017_v57 = vadd.f32 %v2016_v44, %v2015_v47 }
 0x25b   :  { %v2018_v61 = vmul.f32 0.05, %v2017_v57  ;;  %v2019_v0 = vmul.f32 %v1932_v60, %v1932_v60  ;;  %v2022_v24 = vcombine.high %v1932_v60, %v1932_v60  ;;  %v2029_v49 = vrot.slane %v1932_v60, %v2686_v30 }
 0x25d   :  { %v2020_v17 = vsub.f32 %v2018_v61, %v2019_v0  ;;  %v2036_v18 = vrot.slane %v2022_v24, %v2686_v30  ;;  %v2037_v32 = vcombine.high %v2029_v49, %v2029_v49  ;;  %v2043_v3 = vsub.f32 %v3101_v27, %v2029_v49 }
 0x25e   :  { %v2047_v56 = vsub.f32 %v3117_v31, %v2029_v49  ;;  %v2048_v14 = vsub.f32 %v3126_v48, %v2029_v49  ;;  %v2052_v25 = vsub.f32 %v3155_v10, %v2029_v49  ;;  %v2287_v31 = vld [vmem:[%s3225_s5] ss:$0 sm:$0xff] }
 0x25f   :  { %v2038_v22 = vcombine.high %v2036_v18, %v2036_v18  ;;  %v2044_v5 = vsub.f32 %v3103_v4, %v2037_v32  ;;  %v2045_v39 = vsub.f32 %v3105_v42, %v2036_v18  ;;  %v2049_v40 = vsub.f32 %v3128_v53, %v2037_v32  ;;  %v2288_v4 = vld [vmem:[%s3226_s6] ss:$0 sm:$0xff] }
 0x260   :  { %v2050_v54 = vsub.f32 %v3136_v38, %v2036_v18  ;;  %v2053_v16 = vadd.f32 1e-05, %v2020_v17  ;;  %v2093_v48 = vcombine.high %v2287_v31, %v2287_v31  ;;  %v2130_v42 = vcombine.high %v2288_v4, %v2288_v4 }
 0x261   :  { %v2046_v19 = vsub.f32 %v3108_v52, %v2038_v22  ;;  %v2051_v27 = vsub.f32 %v3149_v62, %v2038_v22  ;;  %v2100_v53 = vrot.slane %v2287_v31, %v2686_v30  ;;  %v2137_v52 = vrot.slane %v2288_v4, %v2686_v30 }
 0x262   :  { %2534 = vrsqrt.f32 %v2053_v16  ;;  %v2107_v38 = vrot.slane %v2093_v48, %v2686_v30  ;;  %v2144_v62 = vrot.slane %v2130_v42, %v2686_v30 }
 0x263   :  { %v2108_v51 = vcombine.high %v2100_v53, %v2100_v53  ;;  %v2145_v20 = vcombine.high %v2137_v52, %v2137_v52 }
 0x264   :  { %v2109_v2 = vcombine.high %v2107_v38, %v2107_v38  ;;  %v2146_v26 = vcombine.high %v2144_v62, %v2144_v62 }
 0x26c   :  { %v2535_v23 = vpop.eup %2534 }
 0x26d   :  { %v2056_v41 = vcombine.high %v2535_v23, %v2535_v23  ;;  %v2063_v10 = vrot.slane %v2535_v23, %v2686_v30 }
 0x26f   :  { %v2070_v1 = vrot.slane %v2056_v41, %v2686_v30  ;;  %v2071_v59 = vcombine.high %v2063_v10, %v2063_v10  ;;  %v2077_v63 = vmul.f32 %v2063_v10, %v2043_v3  ;;  %v2081_v11 = vmul.f32 %v2063_v10, %v2047_v56 }
 0x270   :  { %v2082_v12 = vmul.f32 %v2063_v10, %v2048_v14  ;;  %v2086_v15 = vmul.f32 %v2063_v10, %v2052_v25 }
 0x271   :  { %v2072_v7 = vcombine.high %v2070_v1, %v2070_v1  ;;  %v2078_v37 = vmul.f32 %v2071_v59, %v2044_v5  ;;  %v2079_v21 = vmul.f32 %v2070_v1, %v2045_v39  ;;  %v2083_v29 = vmul.f32 %v2071_v59, %v2049_v40 }
 0x272   :  { %v2084_v8 = vmul.f32 %v2070_v1, %v2050_v54  ;;  %v2114_v33 = vmul.f32 %v2100_v53, %v2077_v63  ;;  %v2118_v34 = vmul.f32 %v2100_v53, %v2081_v11  ;;  %v2119_v50 = vmul.f32 %v2100_v53, %v2082_v12 }
 0x273   :  { %v2080_v6 = vmul.f32 %v2072_v7, %v2046_v19  ;;  %v2085_v13 = vmul.f32 %v2072_v7, %v2051_v27  ;;  %v2115_v45 = vmul.f32 %v2108_v51, %v2078_v37  ;;  %v2116_v46 = vmul.f32 %v2107_v38, %v2079_v21 }
 0x274   :  { %v2120_v58 = vmul.f32 %v2108_v51, %v2083_v29  ;;  %v2121_v9 = vmul.f32 %v2107_v38, %v2084_v8  ;;  %v2123_v28 = vmul.f32 %v2100_v53, %v2086_v15  ;;  %v2151_v55 = vadd.f32 %v2137_v52, %v2114_v33 }
 0x275   :  { %v2117_v35 = vmul.f32 %v2109_v2, %v2080_v6  ;;  %v2122_v36 = vmul.f32 %v2109_v2, %v2085_v13  ;;  %v2152_v47 = vadd.f32 %v2145_v20, %v2115_v45  ;;  %v2153_v43 = vadd.f32 %v2144_v62, %v2116_v46 }
 0x276   :  { %v2155_v44 = vadd.f32 %v2137_v52, %v2118_v34  ;;  %v2156_v60 = vadd.f32 %v2137_v52, %v2119_v50  ;;  %v2157_v57 = vadd.f32 %v2145_v20, %v2120_v58  ;;  %v2158_v61 = vadd.f32 %v2144_v62, %v2121_v9 }
 0x277   :  { %v2154_v0 = vadd.f32 %v2146_v26, %v2117_v35  ;;  %v2159_v24 = vadd.f32 %v2146_v26, %v2122_v36  ;;  %v2160_v49 = vadd.f32 %v2137_v52, %v2123_v28  ;;  %v2161_v17 = vmax.f32 %v2151_v55, 0.0 }
 0x278   :  { %v2162_v18 = vmax.f32 %v2152_v47, 0.0  ;;  %v2163_v32 = vmax.f32 %v2153_v43, 0.0  ;;  %v2165_v3 = vmax.f32 %v2155_v44, 0.0  ;;  %v2166_v56 = vmax.f32 %v2156_v60, 0.0 }
 0x279   :  { %v2164_v14 = vmax.f32 %v2154_v0, 0.0  ;;  %v2167_v25 = vmax.f32 %v2157_v57, 0.0  ;;  %v2168_v22 = vmax.f32 %v2158_v61, 0.0  ;;  %v2169_v5 = vmax.f32 %v2159_v24, 0.0 }
 0x27a   :  { %v2170_v39 = vmax.f32 %v2160_v49, 0.0  ;;  %v2181_v40 = vcombine.low %v2161_v17, %v2162_v18  ;;  %v2204_v54 = vrot.slane %v2165_v3, %v2686_v30 }
 0x27b   :  { %v2182_v16 = vcombine.low %v2163_v32, %v2164_v14  ;;  %v2205_v19 = vcombine.low %v2166_v56, %v2167_v25  ;;  %v2206_v27 = vcombine.low %v2168_v22, %v2169_v5 }
 0x27c   :  { %v2228_v31 = vrot.slane %v2170_v39, %v2686_v30  ;;  %2234 = vst.msk [vmem:[%s3227_s7 + $0x8] sm:$0x3] %vm1918_vm13, %v2204_v54  ;;  %v2189_v4 = vrot.slane %v2181_v40, %v2686_v30 }
 0x27d   :  { %v2196_v48 = vrot.slane %v2182_v16, %v2686_v30  ;;  %v2213_v42 = vrot.slane %v2205_v19, %v2686_v30  ;;  %v2220_v53 = vrot.slane %v2206_v27, %v2686_v30 }
 0x27e   :  { %2236 = vst.msk [vmem:[%s3227_s7 + $0x18] sm:$0x3] %vm1918_vm13, %v2228_v31 }
 0x27f   :  { %v2197_v38 = vcombine.low %v2189_v4, %v2196_v48  ;;  %v2221_v23 = vcombine.low %v2213_v42, %v2220_v53 }
 0x281   :  { %2233 = vst.msk [vmem:[%s3227_s7] sm:$0xff] %vm1916_vm12, %v2197_v38  ;;  %2235 = vst.msk [vmem:[%s3227_s7 + $0x10] sm:$0xff] %vm1916_vm12, %v2221_v23 }
 0x282   :  { %2241 = vsyncpa [#allocation3], 1 }
 0x283   :  { %2242 = vsyncpa [#allocation4], 1 }

</bundles_post_ra>
